<compile_context>
chip_gen: v5e
topology: v5e:2x2
jax: 0.10.0
libtpu: 0.0.40
codegen_flags: <defaults>
</compile_context>

<pallas_src>
import functools

import numpy as np
import jax
import jax.numpy as jnp
from jax.experimental import pallas as pl
from jax.experimental.pallas import tpu as pltpu

LN_EPS = 1e-5  # torch.nn.LayerNorm default eps


# ----------------------------------------------------------------------------
# helpers usable both inside Pallas kernels and in the pure-JAX reference
# ----------------------------------------------------------------------------
def _layernorm(x, g, b):
    mu = jnp.mean(x, axis=-1, keepdims=True)
    xc = x - mu
    var = jnp.mean(xc * xc, axis=-1, keepdims=True)
    inv = jax.lax.rsqrt(var + LN_EPS)
    return xc * inv * g + b


def _gelu(x):
    # TODO(synk): torch.nn.GELU default is exact erf; tanh approximation used
    # for portable Mosaic lowering (difference ~1e-3, inside test tolerance).
    c = jnp.sqrt(2.0 / jnp.pi).astype(x.dtype)
    return 0.5 * x * (1.0 + jnp.tanh(c * (x + 0.044715 * x * x * x)))


def _mm(a, w_ref, b_ref=None):
    """Matmul with bf16 (or weight-dtype) MXU inputs and f32 accumulation."""
    w = w_ref[...]
    y = jnp.dot(a.astype(w.dtype), w, preferred_element_type=jnp.float32)
    if b_ref is not None:
        y = y + b_ref[...]
    return y


# ----------------------------------------------------------------------------
# fused decoder kernel
# ----------------------------------------------------------------------------
def fused_decoder_kernel(
    x_ref, embed_w, embed_b, pos_ref,
    ln1g, ln1b, qkv_w, qkv_b, proj_w, proj_b,
    ln2g, ln2b, fc1_w, fc1_b, fc2_w, fc2_b,
    norm_g, norm_b, pred_w, pred_b,
    o_ref, act_ref, ctx_ref, *, num_heads):
    layer = pl.program_id(1)
    n_layers = pl.num_programs(1)

    # --- layer-0 prologue: decoder_embed + positional encoding ---
    @pl.when(layer == 0)
    def _():
        act_ref[...] = _mm(x_ref[...], embed_w, embed_b) + pos_ref[...]

    x = act_ref[...]                                 # (S, D) f32, VMEM-resident
    S, D = x.shape
    hd = D // num_heads
    scale = jnp.float32(1.0 / np.sqrt(hd))

    # --- attention branch (pre-norm) ---
    h = _layernorm(x, ln1g[...], ln1b[...])
    qkv = _mm(h, qkv_w, qkv_b)                       # (S, 3D) f32
    q = qkv[:, 0:D]
    k = qkv[:, D:2 * D]
    v = qkv[:, 2 * D:3 * D]
    for hh in range(num_heads):                      # static head loop
        sl = slice(hh * hd, (hh + 1) * hd)
        s = jnp.dot(q[:, sl] * scale, k[:, sl].T,
                    preferred_element_type=jnp.float32)          # (S, S)
        s = s - jnp.max(s, axis=-1, keepdims=True)
        p = jnp.exp(s)
        p = p * pl.reciprocal(jnp.sum(p, axis=-1, keepdims=True), approx=True)
        # write the head output directly into its VMEM slice (no concatenate)
        ctx_ref[:, sl] = jnp.dot(p, v[:, sl], preferred_element_type=jnp.float32)
    attn = _mm(ctx_ref[...], proj_w, proj_b)
    x1 = x + attn

    # --- MLP branch (pre-norm) ---
    h2 = _layernorm(x1, ln2g[...], ln2b[...])
    m = _gelu(_mm(h2, fc1_w, fc1_b))
    y = x1 + _mm(m, fc2_w, fc2_b)
    act_ref[...] = y                                 # stays resident for layer+1

    # --- last-layer epilogue: final LayerNorm + decoder_pred ---
    @pl.when(layer == n_layers - 1)
    def _():
        hf = _layernorm(y, norm_g[...], norm_b[...])
        o_ref[...] = _mm(hf, pred_w, pred_b)


# ----------------------------------------------------------------------------
# pallas_call wrapper
# ----------------------------------------------------------------------------
def masked_decoder_forward(x, params, num_heads):
    """Equivalent of MaskedDecoder2D.forward(x) (return_attention=False)."""
    B, S, E = x.shape
    D = params["embed_w"].shape[1]
    P = params["pred_w"].shape[1]
    depth = params["qkv_w"].shape[0]

    def const(shape):
        return pl.BlockSpec(shape, lambda b, l, _s=len(shape): (0,) * _s)

    def per_layer(shape):
        # stacked (depth, r, c) params; layer dim selected by grid index & squeezed
        return pl.BlockSpec((None,) + shape, lambda b, l: (l, 0, 0))

    kern = functools.partial(fused_decoder_kernel, num_heads=num_heads)
    out = pl.pallas_call(
        kern,
        out_shape=jax.ShapeDtypeStruct((B, S, P), jnp.float32),
        grid=(B, depth),
        in_specs=[
            pl.BlockSpec((None, S, E), lambda b, l: (b, 0, 0)),   # x
            const((E, D)), const((1, D)), const((S, D)),          # embed w/b, pos
            per_layer((1, D)), per_layer((1, D)),                 # ln1 g/b
            per_layer((D, 3 * D)), per_layer((1, 3 * D)),         # qkv w/b
            per_layer((D, D)), per_layer((1, D)),                 # proj w/b
            per_layer((1, D)), per_layer((1, D)),                 # ln2 g/b
            per_layer((D, 4 * D)), per_layer((1, 4 * D)),         # fc1 w/b
            per_layer((4 * D, D)), per_layer((1, D)),             # fc2 w/b
            const((1, D)), const((1, D)),                         # final norm g/b
            const((D, P)), const((1, P)),                         # pred w/b
        ],
        out_specs=pl.BlockSpec((None, S, P), lambda b, l: (b, 0, 0)),
        scratch_shapes=[pltpu.VMEM((S, D), jnp.float32),          # activations
                        pltpu.VMEM((S, D), jnp.float32)],         # attn context
        compiler_params=pltpu.CompilerParams(
            dimension_semantics=("parallel", "arbitrary")),
    )(x,
      params["embed_w"], params["embed_b"], params["pos"],
      params["ln1g"], params["ln1b"], params["qkv_w"], params["qkv_b"],
      params["proj_w"], params["proj_b"], params["ln2g"], params["ln2b"],
      params["fc1_w"], params["fc1_b"], params["fc2_w"], params["fc2_b"],
      params["norm_g"], params["norm_b"], params["pred_w"], params["pred_b"])
    return out[:, 1:, :]          # drop cls token (glue outside kernel)


# ----------------------------------------------------------------------------
# positional encoding (MAE-style 2D sin-cos, with cls token row of zeros)
# ----------------------------------------------------------------------------
def _sincos_1d(embed_dim, pos):
    omega = np.arange(embed_dim // 2, dtype=np.float64) / (embed_dim / 2.0)
    omega = 1.0 / (10000.0 ** omega)
    out = np.einsum("m,d->md", pos.reshape(-1), omega)
    return np.concatenate([np.sin(out), np.cos(out)], axis=1)


def get_2d_pos_encoding(embedding_dimension, num_patches_x, num_patches_y,
                        cls_token=False):
    gy = np.arange(num_patches_y, dtype=np.float64)
    gx = np.arange(num_patches_x, dtype=np.float64)
    grid = np.meshgrid(gx, gy)                       # x varies fastest
    grid = np.stack(grid, axis=0)                    # (2, ny, nx)
    emb_h = _sincos_1d(embedding_dimension // 2, grid[1])
    emb_w = _sincos_1d(embedding_dimension // 2, grid[0])
    pos = np.concatenate([emb_h, emb_w], axis=1)     # (N, D)
    if cls_token:
        pos = np.concatenate([np.zeros((1, embedding_dimension)), pos], axis=0)
    return pos


# ----------------------------------------------------------------------------
# deterministic parameter init (shapes follow the PyTorch module __init__,
# per-block params stacked along a leading `depth` axis; big weights in bf16)
# ----------------------------------------------------------------------------
def init_params(key, E, D, patch_size, depth, npx, npy, wdtype=jnp.bfloat16):
    def lin(k, din, dout):
        kw, kb = jax.random.split(k)
        w = (jax.random.normal(kw, (din, dout), jnp.float32) * 0.02).astype(wdtype)
        b = jax.random.normal(kb, (1, dout), jnp.float32) * 0.02
        return w, b

    keys = jax.random.split(key, depth + 2)
    embed_w, embed_b = lin(keys[0], E, D)
    pred_w, pred_b = lin(keys[1], D, patch_size)

    qkv_w, qkv_b, proj_w, proj_b = [], [], [], []
    fc1_w, fc1_b, fc2_w, fc2_b = [], [], [], []
    for i in range(depth):
        kq, kp, k1, k2 = jax.random.split(keys[2 + i], 4)
        w, b = lin(kq, D, 3 * D); qkv_w.append(w); qkv_b.append(b)
        w, b = lin(kp, D, D);     proj_w.append(w); proj_b.append(b)
        w, b = lin(k1, D, 4 * D); fc1_w.append(w);  fc1_b.append(b)
        w, b = lin(k2, 4 * D, D); fc2_w.append(w);  fc2_b.append(b)

    ones = jnp.ones((depth, 1, D), jnp.float32)
    zeros = jnp.zeros((depth, 1, D), jnp.float32)
    pos = jnp.asarray(get_2d_pos_encoding(D, npx, npy, cls_token=True), jnp.float32)
    # mask_token exists in the module but is only used by masked_forward (not forward).
    mask_token = jnp.zeros((1, 1, D), jnp.float32)
    return dict(
        embed_w=embed_w, embed_b=embed_b, pos=pos,
        ln1g=ones, ln1b=zeros,
        qkv_w=jnp.stack(qkv_w), qkv_b=jnp.stack(qkv_b),
        proj_w=jnp.stack(proj_w), proj_b=jnp.stack(proj_b),
        ln2g=ones, ln2b=zeros,
        fc1_w=jnp.stack(fc1_w), fc1_b=jnp.stack(fc1_b),
        fc2_w=jnp.stack(fc2_w), fc2_b=jnp.stack(fc2_b),
        norm_g=jnp.ones((1, D), jnp.float32),
        norm_b=jnp.zeros((1, D), jnp.float32),
        pred_w=pred_w, pred_b=pred_b, mask_token=mask_token)


# ----------------------------------------------------------------------------
# pure-JAX reference (for a sanity check against the Pallas path)
# ----------------------------------------------------------------------------
def ref_forward(x, params, num_heads):
    B, S, E = x.shape
    D = params["embed_w"].shape[1]
    depth = params["qkv_w"].shape[0]
    hd = D // num_heads
    scale = hd ** -0.5
    f32 = lambda a: a.astype(jnp.float32)
    y = x @ f32(params["embed_w"]) + params["embed_b"] + params["pos"]
    for i in range(depth):
        h = _layernorm(y, params["ln1g"][i], params["ln1b"][i])
        qkv = h @ f32(params["qkv_w"][i]) + params["qkv_b"][i]
        q, k, v = qkv[..., :D], qkv[..., D:2 * D], qkv[..., 2 * D:]
        q = q.reshape(B, S, num_heads, hd).transpose(0, 2, 1, 3) * scale
        k = k.reshape(B, S, num_heads, hd).transpose(0, 2, 1, 3)
        v = v.reshape(B, S, num_heads, hd).transpose(0, 2, 1, 3)
        s = jnp.einsum("bhqd,bhkd->bhqk", q, k)
        a = jax.nn.softmax(s, axis=-1)
        o = jnp.einsum("bhqk,bhkd->bhqd", a, v).transpose(0, 2, 1, 3).reshape(B, S, D)
        o = o @ f32(params["proj_w"][i]) + params["proj_b"][i]
        y1 = y + o
        h2 = _layernorm(y1, params["ln2g"][i], params["ln2b"][i])
        m = _gelu(h2 @ f32(params["fc1_w"][i]) + params["fc1_b"][i])
        m = m @ f32(params["fc2_w"][i]) + params["fc2_b"][i]
        y = y1 + m
    y = _layernorm(y, params["norm_g"], params["norm_b"])
    y = y @ f32(params["pred_w"]) + params["pred_b"]
    return y[:, 1:, :]


if __name__ == "__main__":
    patch_size = 16
    num_patches_x = 4
    num_patches_y = 4
    embedding_dimension = 32
    decoder_embedding_dimension = 32
    depth = 2
    num_heads = 4
    batch = 2
    seq = num_patches_x * num_patches_y + 1   # tokens include cls -> 17

    key = jax.random.PRNGKey(0)
    kparam, kx = jax.random.split(key)
    params = init_params(kparam, embedding_dimension, decoder_embedding_dimension,
                         patch_size, depth, num_patches_x, num_patches_y)
    x = jax.random.normal(kx, (batch, seq, embedding_dimension), jnp.float32)

    out = jax.block_until_ready(masked_decoder_forward(x, params, num_heads))
    assert out.shape == (batch, seq - 1, patch_size), out.shape

    ref = jax.block_until_ready(ref_forward(x, params, num_heads))
    np.testing.assert_allclose(np.asarray(out), np.asarray(ref),
                               rtol=2e-2, atol=2e-2)
    print("KERNEL_OK")
</pallas_src>

<mosaic_0001>
module attributes {stable_mosaic.version = 11 : i64} {
  func.func @fused_decoder_kernel(%arg0: i32, %arg1: i32, %arg2: memref<1x17x32xf32, #tpu.memory_space<vmem>>, %arg3: memref<32x32xbf16, #tpu.memory_space<vmem>>, %arg4: memref<1x32xf32, #tpu.memory_space<vmem>>, %arg5: memref<17x32xf32, #tpu.memory_space<vmem>>, %arg6: memref<1x1x32xf32, #tpu.memory_space<vmem>>, %arg7: memref<1x1x32xf32, #tpu.memory_space<vmem>>, %arg8: memref<1x32x96xbf16, #tpu.memory_space<vmem>>, %arg9: memref<1x1x96xf32, #tpu.memory_space<vmem>>, %arg10: memref<1x32x32xbf16, #tpu.memory_space<vmem>>, %arg11: memref<1x1x32xf32, #tpu.memory_space<vmem>>, %arg12: memref<1x1x32xf32, #tpu.memory_space<vmem>>, %arg13: memref<1x1x32xf32, #tpu.memory_space<vmem>>, %arg14: memref<1x32x128xbf16, #tpu.memory_space<vmem>>, %arg15: memref<1x1x128xf32, #tpu.memory_space<vmem>>, %arg16: memref<1x128x32xbf16, #tpu.memory_space<vmem>>, %arg17: memref<1x1x32xf32, #tpu.memory_space<vmem>>, %arg18: memref<1x32xf32, #tpu.memory_space<vmem>>, %arg19: memref<1x32xf32, #tpu.memory_space<vmem>>, %arg20: memref<32x16xbf16, #tpu.memory_space<vmem>>, %arg21: memref<1x16xf32, #tpu.memory_space<vmem>>, %arg22: memref<1x17x16xf32, #tpu.memory_space<vmem>>, %arg23: memref<17x32xf32, #tpu.memory_space<vmem>>, %arg24: memref<17x32xf32, #tpu.memory_space<vmem>>) attributes {dimension_semantics = [#tpu.dimension_semantics<parallel>, #tpu.dimension_semantics<arbitrary>], iteration_bounds = array<i64: 2, 2>, scalar_prefetch = 0 : i64, scratch_operands = 2 : i64, tpu.core_type = #tpu.core_type<tc>, window_params = [{transform_indices = @transform_0, window_bounds = array<i64: 1, 17, 32>}, {pipeline_mode = #tpu.pipeline_mode<synchronous>, transform_indices = @transform_1, window_bounds = array<i64: 32, 32>}, {pipeline_mode = #tpu.pipeline_mode<synchronous>, transform_indices = @transform_2, window_bounds = array<i64: 1, 32>}, {pipeline_mode = #tpu.pipeline_mode<synchronous>, transform_indices = @transform_3, window_bounds = array<i64: 17, 32>}, {transform_indices = @transform_4, window_bounds = array<i64: 1, 1, 32>}, {transform_indices = @transform_5, window_bounds = array<i64: 1, 1, 32>}, {transform_indices = @transform_6, window_bounds = array<i64: 1, 32, 96>}, {transform_indices = @transform_7, window_bounds = array<i64: 1, 1, 96>}, {transform_indices = @transform_8, window_bounds = array<i64: 1, 32, 32>}, {transform_indices = @transform_9, window_bounds = array<i64: 1, 1, 32>}, {transform_indices = @transform_10, window_bounds = array<i64: 1, 1, 32>}, {transform_indices = @transform_11, window_bounds = array<i64: 1, 1, 32>}, {transform_indices = @transform_12, window_bounds = array<i64: 1, 32, 128>}, {transform_indices = @transform_13, window_bounds = array<i64: 1, 1, 128>}, {transform_indices = @transform_14, window_bounds = array<i64: 1, 128, 32>}, {transform_indices = @transform_15, window_bounds = array<i64: 1, 1, 32>}, {pipeline_mode = #tpu.pipeline_mode<synchronous>, transform_indices = @transform_16, window_bounds = array<i64: 1, 32>}, {pipeline_mode = #tpu.pipeline_mode<synchronous>, transform_indices = @transform_17, window_bounds = array<i64: 1, 32>}, {pipeline_mode = #tpu.pipeline_mode<synchronous>, transform_indices = @transform_18, window_bounds = array<i64: 32, 16>}, {pipeline_mode = #tpu.pipeline_mode<synchronous>, transform_indices = @transform_19, window_bounds = array<i64: 1, 16>}, {transform_indices = @transform_20, window_bounds = array<i64: 1, 17, 16>}]} {
    %c0_i32 = arith.constant 0 : i32
    %0 = arith.cmpi eq, %arg1, %c0_i32 : i32
    %1 = arith.extui %0 : i1 to i32
    %c0_i32_0 = arith.constant 0 : i32
    %2 = arith.cmpi ne, %1, %c0_i32_0 : i32
    scf.if %2 {
      %c0_85 = arith.constant 0 : index
      %c0_86 = arith.constant 0 : index
      %c0_87 = arith.constant 0 : index
      %184 = vector.load %arg2[%c0_85, %c0_86, %c0_87] : memref<1x17x32xf32, #tpu.memory_space<vmem>>, vector<1x17x32xf32>
      %185 = vector.shape_cast %184 : vector<1x17x32xf32> to vector<17x32xf32>
      %c0_88 = arith.constant 0 : index
      %c0_89 = arith.constant 0 : index
      %186 = vector.load %arg3[%c0_88, %c0_89] : memref<32x32xbf16, #tpu.memory_space<vmem>>, vector<32x32xbf16>
      %187 = arith.truncf %185 : vector<17x32xf32> to vector<17x32xbf16>
      %cst_90 = arith.constant dense<0.000000e+00> : vector<17x32xf32>
      %188 = tpu.matmul %187, %186, %cst_90 {dimension_numbers = #tpu.dot_dimension_numbers<[1], [0], [0], [1], [0, 0, 1, 1], [], []>} : vector<17x32xbf16>, vector<32x32xbf16>, vector<17x32xf32> -> vector<17x32xf32>
      %c0_91 = arith.constant 0 : index
      %c0_92 = arith.constant 0 : index
      %189 = vector.load %arg4[%c0_91, %c0_92] : memref<1x32xf32, #tpu.memory_space<vmem>>, vector<1x32xf32>
      %190 = vector.broadcast %189 : vector<1x32xf32> to vector<17x32xf32>
      %191 = arith.addf %188, %190 : vector<17x32xf32>
      %c0_93 = arith.constant 0 : index
      %c0_94 = arith.constant 0 : index
      %192 = vector.load %arg5[%c0_93, %c0_94] : memref<17x32xf32, #tpu.memory_space<vmem>>, vector<17x32xf32>
      %193 = arith.addf %191, %192 : vector<17x32xf32>
      %c0_95 = arith.constant 0 : index
      %c0_96 = arith.constant 0 : index
      %194 = vector.load %arg23[%c0_95, %c0_96] : memref<17x32xf32, #tpu.memory_space<vmem>>, vector<17x32xf32>
      tpu.vector_store %arg23[%c0_95, %c0_96], %193 {strides = array<i32>} : memref<17x32xf32, #tpu.memory_space<vmem>>, vector<17x32xf32>,
    } else {
    }
    %c0 = arith.constant 0 : index
    %c0_1 = arith.constant 0 : index
    %3 = vector.load %arg23[%c0, %c0_1] : memref<17x32xf32, #tpu.memory_space<vmem>>, vector<17x32xf32>
    %c0_2 = arith.constant 0 : index
    %c0_3 = arith.constant 0 : index
    %c0_4 = arith.constant 0 : index
    %4 = vector.load %arg6[%c0_2, %c0_3, %c0_4] : memref<1x1x32xf32, #tpu.memory_space<vmem>>, vector<1x1x32xf32>
    %5 = vector.shape_cast %4 : vector<1x1x32xf32> to vector<1x32xf32>
    %c0_5 = arith.constant 0 : index
    %c0_6 = arith.constant 0 : index
    %c0_7 = arith.constant 0 : index
    %6 = vector.load %arg7[%c0_5, %c0_6, %c0_7] : memref<1x1x32xf32, #tpu.memory_space<vmem>>, vector<1x1x32xf32>
    %7 = vector.shape_cast %6 : vector<1x1x32xf32> to vector<1x32xf32>
    %cst = arith.constant dense<0.000000e+00> : vector<17xf32>
    %8 = vector.multi_reduction <add>, %3, %cst [1] : vector<17x32xf32> to vector<17xf32>
    %9 = vector.shape_cast %8 : vector<17xf32> to vector<17x1xf32>
    %cst_8 = arith.constant 3.200000e+01 : f32
    %10 = vector.broadcast %cst_8 : f32 to vector<17x1xf32>
    %11 = arith.divf %9, %10 : vector<17x1xf32>
    %12 = vector.broadcast %11 : vector<17x1xf32> to vector<17x32xf32>
    %13 = arith.subf %3, %12 : vector<17x32xf32>
    %14 = arith.mulf %13, %13 : vector<17x32xf32>
    %cst_9 = arith.constant dense<0.000000e+00> : vector<17xf32>
    %15 = vector.multi_reduction <add>, %14, %cst_9 [1] : vector<17x32xf32> to vector<17xf32>
    %16 = vector.shape_cast %15 : vector<17xf32> to vector<17x1xf32>
    %cst_10 = arith.constant 3.200000e+01 : f32
    %17 = vector.broadcast %cst_10 : f32 to vector<17x1xf32>
    %18 = arith.divf %16, %17 : vector<17x1xf32>
    %cst_11 = arith.constant 9.99999974E-6 : f32
    %19 = vector.broadcast %cst_11 : f32 to vector<17x1xf32>
    %20 = arith.addf %18, %19 : vector<17x1xf32>
    %21 = math.rsqrt %20 : vector<17x1xf32>
    %22 = vector.broadcast %21 : vector<17x1xf32> to vector<17x32xf32>
    %23 = arith.mulf %13, %22 : vector<17x32xf32>
    %24 = vector.broadcast %5 : vector<1x32xf32> to vector<17x32xf32>
    %25 = arith.mulf %23, %24 : vector<17x32xf32>
    %26 = vector.broadcast %7 : vector<1x32xf32> to vector<17x32xf32>
    %27 = arith.addf %25, %26 : vector<17x32xf32>
    %c0_12 = arith.constant 0 : index
    %c0_13 = arith.constant 0 : index
    %c0_14 = arith.constant 0 : index
    %28 = vector.load %arg8[%c0_12, %c0_13, %c0_14] : memref<1x32x96xbf16, #tpu.memory_space<vmem>>, vector<1x32x96xbf16>
    %29 = vector.shape_cast %28 : vector<1x32x96xbf16> to vector<32x96xbf16>
    %30 = arith.truncf %27 : vector<17x32xf32> to vector<17x32xbf16>
    %cst_15 = arith.constant dense<0.000000e+00> : vector<17x96xf32>
    %31 = tpu.matmul %30, %29, %cst_15 {dimension_numbers = #tpu.dot_dimension_numbers<[1], [0], [0], [1], [0, 0, 1, 1], [], []>} : vector<17x32xbf16>, vector<32x96xbf16>, vector<17x96xf32> -> vector<17x96xf32>
    %c0_16 = arith.constant 0 : index
    %c0_17 = arith.constant 0 : index
    %c0_18 = arith.constant 0 : index
    %32 = vector.load %arg9[%c0_16, %c0_17, %c0_18] : memref<1x1x96xf32, #tpu.memory_space<vmem>>, vector<1x1x96xf32>
    %33 = vector.shape_cast %32 : vector<1x1x96xf32> to vector<1x96xf32>
    %34 = vector.broadcast %33 : vector<1x96xf32> to vector<17x96xf32>
    %35 = arith.addf %31, %34 : vector<17x96xf32>
    %36 = vector.extract_strided_slice %35 {offsets = [0, 0], sizes = [17, 32], strides = [1, 1]} : vector<17x96xf32> to vector<17x32xf32>
    %37 = vector.extract_strided_slice %35 {offsets = [0, 32], sizes = [17, 32], strides = [1, 1]} : vector<17x96xf32> to vector<17x32xf32>
    %38 = vector.extract_strided_slice %35 {offsets = [0, 64], sizes = [17, 32], strides = [1, 1]} : vector<17x96xf32> to vector<17x32xf32>
    %39 = vector.extract_strided_slice %36 {offsets = [0, 0], sizes = [17, 8], strides = [1, 1]} : vector<17x32xf32> to vector<17x8xf32>
    %cst_19 = arith.constant 0.353553385 : f32
    %40 = vector.broadcast %cst_19 : f32 to vector<17x8xf32>
    %41 = arith.mulf %39, %40 : vector<17x8xf32>
    %42 = vector.extract_strided_slice %37 {offsets = [0, 0], sizes = [17, 8], strides = [1, 1]} : vector<17x32xf32> to vector<17x8xf32>
    %43 = tpu.transpose %42, [1, 0] : vector<17x8xf32> -> vector<8x17xf32>
    %cst_20 = arith.constant dense<0.000000e+00> : vector<17x17xf32>
    %44 = tpu.matmul %41, %43, %cst_20 {dimension_numbers = #tpu.dot_dimension_numbers<[1], [0], [0], [1], [0, 0, 1, 1], [], []>} : vector<17x8xf32>, vector<8x17xf32>, vector<17x17xf32> -> vector<17x17xf32>
    %cst_21 = arith.constant dense<0xFF800000> : vector<17xf32>
    %45 = vector.multi_reduction <maximumf>, %44, %cst_21 [1] : vector<17x17xf32> to vector<17xf32>
    %46 = vector.shape_cast %45 : vector<17xf32> to vector<17x1xf32>
    %47 = vector.broadcast %46 : vector<17x1xf32> to vector<17x17xf32>
    %48 = arith.subf %44, %47 : vector<17x17xf32>
    %49 = math.exp %48 : vector<17x17xf32>
    %cst_22 = arith.constant dense<0.000000e+00> : vector<17xf32>
    %50 = vector.multi_reduction <add>, %49, %cst_22 [1] : vector<17x17xf32> to vector<17xf32>
    %51 = vector.shape_cast %50 : vector<17xf32> to vector<17x1xf32>
    %52 = tpu.reciprocal %51 {approx = true} : vector<17x1xf32> -> vector<17x1xf32>
    %53 = vector.broadcast %52 : vector<17x1xf32> to vector<17x17xf32>
    %54 = arith.mulf %49, %53 : vector<17x17xf32>
    %55 = vector.extract_strided_slice %38 {offsets = [0, 0], sizes = [17, 8], strides = [1, 1]} : vector<17x32xf32> to vector<17x8xf32>
    %cst_23 = arith.constant dense<0.000000e+00> : vector<17x8xf32>
    %56 = tpu.matmul %54, %55, %cst_23 {dimension_numbers = #tpu.dot_dimension_numbers<[1], [0], [0], [1], [0, 0, 1, 1], [], []>} : vector<17x17xf32>, vector<17x8xf32>, vector<17x8xf32> -> vector<17x8xf32>
    %c0_24 = arith.constant 0 : index
    %c0_25 = arith.constant 0 : index
    %57 = vector.load %arg24[%c0_24, %c0_25] : memref<17x32xf32, #tpu.memory_space<vmem>>, vector<17x8xf32>
    tpu.vector_store %arg24[%c0_24, %c0_25], %56 {strides = array<i32>} : memref<17x32xf32, #tpu.memory_space<vmem>>, vector<17x8xf32>,
    %58 = vector.extract_strided_slice %36 {offsets = [0, 8], sizes = [17, 8], strides = [1, 1]} : vector<17x32xf32> to vector<17x8xf32>
    %cst_26 = arith.constant 0.353553385 : f32
    %59 = vector.broadcast %cst_26 : f32 to vector<17x8xf32>
    %60 = arith.mulf %58, %59 : vector<17x8xf32>
    %61 = vector.extract_strided_slice %37 {offsets = [0, 8], sizes = [17, 8], strides = [1, 1]} : vector<17x32xf32> to vector<17x8xf32>
    %62 = tpu.transpose %61, [1, 0] : vector<17x8xf32> -> vector<8x17xf32>
    %cst_27 = arith.constant dense<0.000000e+00> : vector<17x17xf32>
    %63 = tpu.matmul %60, %62, %cst_27 {dimension_numbers = #tpu.dot_dimension_numbers<[1], [0], [0], [1], [0, 0, 1, 1], [], []>} : vector<17x8xf32>, vector<8x17xf32>, vector<17x17xf32> -> vector<17x17xf32>
    %cst_28 = arith.constant dense<0xFF800000> : vector<17xf32>
    %64 = vector.multi_reduction <maximumf>, %63, %cst_28 [1] : vector<17x17xf32> to vector<17xf32>
    %65 = vector.shape_cast %64 : vector<17xf32> to vector<17x1xf32>
    %66 = vector.broadcast %65 : vector<17x1xf32> to vector<17x17xf32>
    %67 = arith.subf %63, %66 : vector<17x17xf32>
    %68 = math.exp %67 : vector<17x17xf32>
    %cst_29 = arith.constant dense<0.000000e+00> : vector<17xf32>
    %69 = vector.multi_reduction <add>, %68, %cst_29 [1] : vector<17x17xf32> to vector<17xf32>
    %70 = vector.shape_cast %69 : vector<17xf32> to vector<17x1xf32>
    %71 = tpu.reciprocal %70 {approx = true} : vector<17x1xf32> -> vector<17x1xf32>
    %72 = vector.broadcast %71 : vector<17x1xf32> to vector<17x17xf32>
    %73 = arith.mulf %68, %72 : vector<17x17xf32>
    %74 = vector.extract_strided_slice %38 {offsets = [0, 8], sizes = [17, 8], strides = [1, 1]} : vector<17x32xf32> to vector<17x8xf32>
    %cst_30 = arith.constant dense<0.000000e+00> : vector<17x8xf32>
    %75 = tpu.matmul %73, %74, %cst_30 {dimension_numbers = #tpu.dot_dimension_numbers<[1], [0], [0], [1], [0, 0, 1, 1], [], []>} : vector<17x17xf32>, vector<17x8xf32>, vector<17x8xf32> -> vector<17x8xf32>
    %c0_31 = arith.constant 0 : index
    %c8 = arith.constant 8 : index
    %76 = vector.load %arg24[%c0_31, %c8] : memref<17x32xf32, #tpu.memory_space<vmem>>, vector<17x8xf32>
    tpu.vector_store %arg24[%c0_31, %c8], %75 {strides = array<i32>} : memref<17x32xf32, #tpu.memory_space<vmem>>, vector<17x8xf32>,
    %77 = vector.extract_strided_slice %36 {offsets = [0, 16], sizes = [17, 8], strides = [1, 1]} : vector<17x32xf32> to vector<17x8xf32>
    %cst_32 = arith.constant 0.353553385 : f32
    %78 = vector.broadcast %cst_32 : f32 to vector<17x8xf32>
    %79 = arith.mulf %77, %78 : vector<17x8xf32>
    %80 = vector.extract_strided_slice %37 {offsets = [0, 16], sizes = [17, 8], strides = [1, 1]} : vector<17x32xf32> to vector<17x8xf32>
    %81 = tpu.transpose %80, [1, 0] : vector<17x8xf32> -> vector<8x17xf32>
    %cst_33 = arith.constant dense<0.000000e+00> : vector<17x17xf32>
    %82 = tpu.matmul %79, %81, %cst_33 {dimension_numbers = #tpu.dot_dimension_numbers<[1], [0], [0], [1], [0, 0, 1, 1], [], []>} : vector<17x8xf32>, vector<8x17xf32>, vector<17x17xf32> -> vector<17x17xf32>
    %cst_34 = arith.constant dense<0xFF800000> : vector<17xf32>
    %83 = vector.multi_reduction <maximumf>, %82, %cst_34 [1] : vector<17x17xf32> to vector<17xf32>
    %84 = vector.shape_cast %83 : vector<17xf32> to vector<17x1xf32>
    %85 = vector.broadcast %84 : vector<17x1xf32> to vector<17x17xf32>
    %86 = arith.subf %82, %85 : vector<17x17xf32>
    %87 = math.exp %86 : vector<17x17xf32>
    %cst_35 = arith.constant dense<0.000000e+00> : vector<17xf32>
    %88 = vector.multi_reduction <add>, %87, %cst_35 [1] : vector<17x17xf32> to vector<17xf32>
    %89 = vector.shape_cast %88 : vector<17xf32> to vector<17x1xf32>
    %90 = tpu.reciprocal %89 {approx = true} : vector<17x1xf32> -> vector<17x1xf32>
    %91 = vector.broadcast %90 : vector<17x1xf32> to vector<17x17xf32>
    %92 = arith.mulf %87, %91 : vector<17x17xf32>
    %93 = vector.extract_strided_slice %38 {offsets = [0, 16], sizes = [17, 8], strides = [1, 1]} : vector<17x32xf32> to vector<17x8xf32>
    %cst_36 = arith.constant dense<0.000000e+00> : vector<17x8xf32>
    %94 = tpu.matmul %92, %93, %cst_36 {dimension_numbers = #tpu.dot_dimension_numbers<[1], [0], [0], [1], [0, 0, 1, 1], [], []>} : vector<17x17xf32>, vector<17x8xf32>, vector<17x8xf32> -> vector<17x8xf32>
    %c0_37 = arith.constant 0 : index
    %c16 = arith.constant 16 : index
    %95 = vector.load %arg24[%c0_37, %c16] : memref<17x32xf32, #tpu.memory_space<vmem>>, vector<17x8xf32>
    tpu.vector_store %arg24[%c0_37, %c16], %94 {strides = array<i32>} : memref<17x32xf32, #tpu.memory_space<vmem>>, vector<17x8xf32>,
    %96 = vector.extract_strided_slice %36 {offsets = [0, 24], sizes = [17, 8], strides = [1, 1]} : vector<17x32xf32> to vector<17x8xf32>
    %cst_38 = arith.constant 0.353553385 : f32
    %97 = vector.broadcast %cst_38 : f32 to vector<17x8xf32>
    %98 = arith.mulf %96, %97 : vector<17x8xf32>
    %99 = vector.extract_strided_slice %37 {offsets = [0, 24], sizes = [17, 8], strides = [1, 1]} : vector<17x32xf32> to vector<17x8xf32>
    %100 = tpu.transpose %99, [1, 0] : vector<17x8xf32> -> vector<8x17xf32>
    %cst_39 = arith.constant dense<0.000000e+00> : vector<17x17xf32>
    %101 = tpu.matmul %98, %100, %cst_39 {dimension_numbers = #tpu.dot_dimension_numbers<[1], [0], [0], [1], [0, 0, 1, 1], [], []>} : vector<17x8xf32>, vector<8x17xf32>, vector<17x17xf32> -> vector<17x17xf32>
    %cst_40 = arith.constant dense<0xFF800000> : vector<17xf32>
    %102 = vector.multi_reduction <maximumf>, %101, %cst_40 [1] : vector<17x17xf32> to vector<17xf32>
    %103 = vector.shape_cast %102 : vector<17xf32> to vector<17x1xf32>
    %104 = vector.broadcast %103 : vector<17x1xf32> to vector<17x17xf32>
    %105 = arith.subf %101, %104 : vector<17x17xf32>
    %106 = math.exp %105 : vector<17x17xf32>
    %cst_41 = arith.constant dense<0.000000e+00> : vector<17xf32>
    %107 = vector.multi_reduction <add>, %106, %cst_41 [1] : vector<17x17xf32> to vector<17xf32>
    %108 = vector.shape_cast %107 : vector<17xf32> to vector<17x1xf32>
    %109 = tpu.reciprocal %108 {approx = true} : vector<17x1xf32> -> vector<17x1xf32>
    %110 = vector.broadcast %109 : vector<17x1xf32> to vector<17x17xf32>
    %111 = arith.mulf %106, %110 : vector<17x17xf32>
    %112 = vector.extract_strided_slice %38 {offsets = [0, 24], sizes = [17, 8], strides = [1, 1]} : vector<17x32xf32> to vector<17x8xf32>
    %cst_42 = arith.constant dense<0.000000e+00> : vector<17x8xf32>
    %113 = tpu.matmul %111, %112, %cst_42 {dimension_numbers = #tpu.dot_dimension_numbers<[1], [0], [0], [1], [0, 0, 1, 1], [], []>} : vector<17x17xf32>, vector<17x8xf32>, vector<17x8xf32> -> vector<17x8xf32>
    %c0_43 = arith.constant 0 : index
    %c24 = arith.constant 24 : index
    %114 = vector.load %arg24[%c0_43, %c24] : memref<17x32xf32, #tpu.memory_space<vmem>>, vector<17x8xf32>
    tpu.vector_store %arg24[%c0_43, %c24], %113 {strides = array<i32>} : memref<17x32xf32, #tpu.memory_space<vmem>>, vector<17x8xf32>,
    %c0_44 = arith.constant 0 : index
    %c0_45 = arith.constant 0 : index
    %115 = vector.load %arg24[%c0_44, %c0_45] : memref<17x32xf32, #tpu.memory_space<vmem>>, vector<17x32xf32>
    %c0_46 = arith.constant 0 : index
    %c0_47 = arith.constant 0 : index
    %c0_48 = arith.constant 0 : index
    %116 = vector.load %arg10[%c0_46, %c0_47, %c0_48] : memref<1x32x32xbf16, #tpu.memory_space<vmem>>, vector<1x32x32xbf16>
    %117 = vector.shape_cast %116 : vector<1x32x32xbf16> to vector<32x32xbf16>
    %118 = arith.truncf %115 : vector<17x32xf32> to vector<17x32xbf16>
    %cst_49 = arith.constant dense<0.000000e+00> : vector<17x32xf32>
    %119 = tpu.matmul %118, %117, %cst_49 {dimension_numbers = #tpu.dot_dimension_numbers<[1], [0], [0], [1], [0, 0, 1, 1], [], []>} : vector<17x32xbf16>, vector<32x32xbf16>, vector<17x32xf32> -> vector<17x32xf32>
    %c0_50 = arith.constant 0 : index
    %c0_51 = arith.constant 0 : index
    %c0_52 = arith.constant 0 : index
    %120 = vector.load %arg11[%c0_50, %c0_51, %c0_52] : memref<1x1x32xf32, #tpu.memory_space<vmem>>, vector<1x1x32xf32>
    %121 = vector.shape_cast %120 : vector<1x1x32xf32> to vector<1x32xf32>
    %122 = vector.broadcast %121 : vector<1x32xf32> to vector<17x32xf32>
    %123 = arith.addf %119, %122 : vector<17x32xf32>
    %124 = arith.addf %3, %123 : vector<17x32xf32>
    %c0_53 = arith.constant 0 : index
    %c0_54 = arith.constant 0 : index
    %c0_55 = arith.constant 0 : index
    %125 = vector.load %arg12[%c0_53, %c0_54, %c0_55] : memref<1x1x32xf32, #tpu.memory_space<vmem>>, vector<1x1x32xf32>
    %126 = vector.shape_cast %125 : vector<1x1x32xf32> to vector<1x32xf32>
    %c0_56 = arith.constant 0 : index
    %c0_57 = arith.constant 0 : index
    %c0_58 = arith.constant 0 : index
    %127 = vector.load %arg13[%c0_56, %c0_57, %c0_58] : memref<1x1x32xf32, #tpu.memory_space<vmem>>, vector<1x1x32xf32>
    %128 = vector.shape_cast %127 : vector<1x1x32xf32> to vector<1x32xf32>
    %cst_59 = arith.constant dense<0.000000e+00> : vector<17xf32>
    %129 = vector.multi_reduction <add>, %124, %cst_59 [1] : vector<17x32xf32> to vector<17xf32>
    %130 = vector.shape_cast %129 : vector<17xf32> to vector<17x1xf32>
    %cst_60 = arith.constant 3.200000e+01 : f32
    %131 = vector.broadcast %cst_60 : f32 to vector<17x1xf32>
    %132 = arith.divf %130, %131 : vector<17x1xf32>
    %133 = vector.broadcast %132 : vector<17x1xf32> to vector<17x32xf32>
    %134 = arith.subf %124, %133 : vector<17x32xf32>
    %135 = arith.mulf %134, %134 : vector<17x32xf32>
    %cst_61 = arith.constant dense<0.000000e+00> : vector<17xf32>
    %136 = vector.multi_reduction <add>, %135, %cst_61 [1] : vector<17x32xf32> to vector<17xf32>
    %137 = vector.shape_cast %136 : vector<17xf32> to vector<17x1xf32>
    %cst_62 = arith.constant 3.200000e+01 : f32
    %138 = vector.broadcast %cst_62 : f32 to vector<17x1xf32>
    %139 = arith.divf %137, %138 : vector<17x1xf32>
    %cst_63 = arith.constant 9.99999974E-6 : f32
    %140 = vector.broadcast %cst_63 : f32 to vector<17x1xf32>
    %141 = arith.addf %139, %140 : vector<17x1xf32>
    %142 = math.rsqrt %141 : vector<17x1xf32>
    %143 = vector.broadcast %142 : vector<17x1xf32> to vector<17x32xf32>
    %144 = arith.mulf %134, %143 : vector<17x32xf32>
    %145 = vector.broadcast %126 : vector<1x32xf32> to vector<17x32xf32>
    %146 = arith.mulf %144, %145 : vector<17x32xf32>
    %147 = vector.broadcast %128 : vector<1x32xf32> to vector<17x32xf32>
    %148 = arith.addf %146, %147 : vector<17x32xf32>
    %c0_64 = arith.constant 0 : index
    %c0_65 = arith.constant 0 : index
    %c0_66 = arith.constant 0 : index
    %149 = vector.load %arg14[%c0_64, %c0_65, %c0_66] : memref<1x32x128xbf16, #tpu.memory_space<vmem>>, vector<1x32x128xbf16>
    %150 = vector.shape_cast %149 : vector<1x32x128xbf16> to vector<32x128xbf16>
    %151 = arith.truncf %148 : vector<17x32xf32> to vector<17x32xbf16>
    %cst_67 = arith.constant dense<0.000000e+00> : vector<17x128xf32>
    %152 = tpu.matmul %151, %150, %cst_67 {dimension_numbers = #tpu.dot_dimension_numbers<[1], [0], [0], [1], [0, 0, 1, 1], [], []>} : vector<17x32xbf16>, vector<32x128xbf16>, vector<17x128xf32> -> vector<17x128xf32>
    %c0_68 = arith.constant 0 : index
    %c0_69 = arith.constant 0 : index
    %c0_70 = arith.constant 0 : index
    %153 = vector.load %arg15[%c0_68, %c0_69, %c0_70] : memref<1x1x128xf32, #tpu.memory_space<vmem>>, vector<1x1x128xf32>
    %154 = vector.shape_cast %153 : vector<1x1x128xf32> to vector<1x128xf32>
    %155 = vector.broadcast %154 : vector<1x128xf32> to vector<17x128xf32>
    %156 = arith.addf %152, %155 : vector<17x128xf32>
    %cst_71 = arith.constant 0.636619746 : f32
    %157 = math.sqrt %cst_71 : f32
    %cst_72 = arith.constant 5.000000e-01 : f32
    %158 = vector.broadcast %cst_72 : f32 to vector<17x128xf32>
    %159 = arith.mulf %158, %156 : vector<17x128xf32>
    %cst_73 = arith.constant 4.471500e-02 : f32
    %160 = vector.broadcast %cst_73 : f32 to vector<17x128xf32>
    %161 = arith.mulf %160, %156 : vector<17x128xf32>
    %162 = arith.mulf %161, %156 : vector<17x128xf32>
    %163 = arith.mulf %162, %156 : vector<17x128xf32>
    %164 = arith.addf %156, %163 : vector<17x128xf32>
    %165 = vector.broadcast %157 : f32 to vector<17x128xf32>
    %166 = arith.mulf %165, %164 : vector<17x128xf32>
    %167 = math.tanh %166 : vector<17x128xf32>
    %cst_74 = arith.constant 1.000000e+00 : f32
    %168 = vector.broadcast %cst_74 : f32 to vector<17x128xf32>
    %169 = arith.addf %168, %167 : vector<17x128xf32>
    %170 = arith.mulf %159, %169 : vector<17x128xf32>
    %c0_75 = arith.constant 0 : index
    %c0_76 = arith.constant 0 : index
    %c0_77 = arith.constant 0 : index
    %171 = vector.load %arg16[%c0_75, %c0_76, %c0_77] : memref<1x128x32xbf16, #tpu.memory_space<vmem>>, vector<1x128x32xbf16>
    %172 = vector.shape_cast %171 : vector<1x128x32xbf16> to vector<128x32xbf16>
    %173 = arith.truncf %170 : vector<17x128xf32> to vector<17x128xbf16>
    %cst_78 = arith.constant dense<0.000000e+00> : vector<17x32xf32>
    %174 = tpu.matmul %173, %172, %cst_78 {dimension_numbers = #tpu.dot_dimension_numbers<[1], [0], [0], [1], [0, 0, 1, 1], [], []>} : vector<17x128xbf16>, vector<128x32xbf16>, vector<17x32xf32> -> vector<17x32xf32>
    %c0_79 = arith.constant 0 : index
    %c0_80 = arith.constant 0 : index
    %c0_81 = arith.constant 0 : index
    %175 = vector.load %arg17[%c0_79, %c0_80, %c0_81] : memref<1x1x32xf32, #tpu.memory_space<vmem>>, vector<1x1x32xf32>
    %176 = vector.shape_cast %175 : vector<1x1x32xf32> to vector<1x32xf32>
    %177 = vector.broadcast %176 : vector<1x32xf32> to vector<17x32xf32>
    %178 = arith.addf %174, %177 : vector<17x32xf32>
    %179 = arith.addf %124, %178 : vector<17x32xf32>
    %c0_82 = arith.constant 0 : index
    %c0_83 = arith.constant 0 : index
    %180 = vector.load %arg23[%c0_82, %c0_83] : memref<17x32xf32, #tpu.memory_space<vmem>>, vector<17x32xf32>
    tpu.vector_store %arg23[%c0_82, %c0_83], %179 {strides = array<i32>} : memref<17x32xf32, #tpu.memory_space<vmem>>, vector<17x32xf32>,
    %c1_i32 = arith.constant 1 : i32
    %181 = arith.cmpi eq, %arg1, %c1_i32 : i32
    %182 = arith.extui %181 : i1 to i32
    %c0_i32_84 = arith.constant 0 : i32
    %183 = arith.cmpi ne, %182, %c0_i32_84 : i32
    scf.if %183 {
      %c0_85 = arith.constant 0 : index
      %c0_86 = arith.constant 0 : index
      %184 = vector.load %arg18[%c0_85, %c0_86] : memref<1x32xf32, #tpu.memory_space<vmem>>, vector<1x32xf32>
      %c0_87 = arith.constant 0 : index
      %c0_88 = arith.constant 0 : index
      %185 = vector.load %arg19[%c0_87, %c0_88] : memref<1x32xf32, #tpu.memory_space<vmem>>, vector<1x32xf32>
      %cst_89 = arith.constant dense<0.000000e+00> : vector<17xf32>
      %186 = vector.multi_reduction <add>, %179, %cst_89 [1] : vector<17x32xf32> to vector<17xf32>
      %187 = vector.shape_cast %186 : vector<17xf32> to vector<17x1xf32>
      %cst_90 = arith.constant 3.200000e+01 : f32
      %188 = vector.broadcast %cst_90 : f32 to vector<17x1xf32>
      %189 = arith.divf %187, %188 : vector<17x1xf32>
      %190 = vector.broadcast %189 : vector<17x1xf32> to vector<17x32xf32>
      %191 = arith.subf %179, %190 : vector<17x32xf32>
      %192 = arith.mulf %191, %191 : vector<17x32xf32>
      %cst_91 = arith.constant dense<0.000000e+00> : vector<17xf32>
      %193 = vector.multi_reduction <add>, %192, %cst_91 [1] : vector<17x32xf32> to vector<17xf32>
      %194 = vector.shape_cast %193 : vector<17xf32> to vector<17x1xf32>
      %cst_92 = arith.constant 3.200000e+01 : f32
      %195 = vector.broadcast %cst_92 : f32 to vector<17x1xf32>
      %196 = arith.divf %194, %195 : vector<17x1xf32>
      %cst_93 = arith.constant 9.99999974E-6 : f32
      %197 = vector.broadcast %cst_93 : f32 to vector<17x1xf32>
      %198 = arith.addf %196, %197 : vector<17x1xf32>
      %199 = math.rsqrt %198 : vector<17x1xf32>
      %200 = vector.broadcast %199 : vector<17x1xf32> to vector<17x32xf32>
      %201 = arith.mulf %191, %200 : vector<17x32xf32>
      %202 = vector.broadcast %184 : vector<1x32xf32> to vector<17x32xf32>
      %203 = arith.mulf %201, %202 : vector<17x32xf32>
      %204 = vector.broadcast %185 : vector<1x32xf32> to vector<17x32xf32>
      %205 = arith.addf %203, %204 : vector<17x32xf32>
      %c0_94 = arith.constant 0 : index
      %c0_95 = arith.constant 0 : index
      %206 = vector.load %arg20[%c0_94, %c0_95] : memref<32x16xbf16, #tpu.memory_space<vmem>>, vector<32x16xbf16>
      %207 = arith.truncf %205 : vector<17x32xf32> to vector<17x32xbf16>
      %cst_96 = arith.constant dense<0.000000e+00> : vector<17x16xf32>
      %208 = tpu.matmul %207, %206, %cst_96 {dimension_numbers = #tpu.dot_dimension_numbers<[1], [0], [0], [1], [0, 0, 1, 1], [], []>} : vector<17x32xbf16>, vector<32x16xbf16>, vector<17x16xf32> -> vector<17x16xf32>
      %c0_97 = arith.constant 0 : index
      %c0_98 = arith.constant 0 : index
      %209 = vector.load %arg21[%c0_97, %c0_98] : memref<1x16xf32, #tpu.memory_space<vmem>>, vector<1x16xf32>
      %210 = vector.broadcast %209 : vector<1x16xf32> to vector<17x16xf32>
      %211 = arith.addf %208, %210 : vector<17x16xf32>
      %c0_99 = arith.constant 0 : index
      %c0_100 = arith.constant 0 : index
      %c0_101 = arith.constant 0 : index
      %212 = vector.load %arg22[%c0_99, %c0_100, %c0_101] : memref<1x17x16xf32, #tpu.memory_space<vmem>>, vector<1x17x16xf32>
      %213 = vector.shape_cast %212 : vector<1x17x16xf32> to vector<17x16xf32>
      %214 = vector.shape_cast %211 : vector<17x16xf32> to vector<1x17x16xf32>
      tpu.vector_store %arg22[%c0_99, %c0_100, %c0_101], %214 {strides = array<i32>} : memref<1x17x16xf32, #tpu.memory_space<vmem>>, vector<1x17x16xf32>,
    } else {
    }
    return
  }
  func.func @transform_0(%arg0: i32, %arg1: i32) -> (i32, i32, i32) {
    %c0_i32 = arith.constant 0 : i32
    %c0_i32_0 = arith.constant 0 : i32
    %c0_i32_1 = arith.constant 0 : i32
    return %arg0, %c0_i32, %c0_i32_0 : i32, i32, i32
  }
  func.func @transform_1(%arg0: i32, %arg1: i32) -> (i32, i32) {
    %c0_i32 = arith.constant 0 : i32
    %c0_i32_0 = arith.constant 0 : i32
    %c0_i32_1 = arith.constant 0 : i32
    return %c0_i32, %c0_i32_0 : i32, i32
  }
  func.func @transform_2(%arg0: i32, %arg1: i32) -> (i32, i32) {
    %c0_i32 = arith.constant 0 : i32
    %c0_i32_0 = arith.constant 0 : i32
    %c0_i32_1 = arith.constant 0 : i32
    return %c0_i32, %c0_i32_0 : i32, i32
  }
  func.func @transform_3(%arg0: i32, %arg1: i32) -> (i32, i32) {
    %c0_i32 = arith.constant 0 : i32
    %c0_i32_0 = arith.constant 0 : i32
    %c0_i32_1 = arith.constant 0 : i32
    return %c0_i32, %c0_i32_0 : i32, i32
  }
  func.func @transform_4(%arg0: i32, %arg1: i32) -> (i32, i32, i32) {
    %c0_i32 = arith.constant 0 : i32
    %c0_i32_0 = arith.constant 0 : i32
    %c0_i32_1 = arith.constant 0 : i32
    return %arg1, %c0_i32, %c0_i32_0 : i32, i32, i32
  }
  func.func @transform_5(%arg0: i32, %arg1: i32) -> (i32, i32, i32) {
    %c0_i32 = arith.constant 0 : i32
    %c0_i32_0 = arith.constant 0 : i32
    %c0_i32_1 = arith.constant 0 : i32
    return %arg1, %c0_i32, %c0_i32_0 : i32, i32, i32
  }
  func.func @transform_6(%arg0: i32, %arg1: i32) -> (i32, i32, i32) {
    %c0_i32 = arith.constant 0 : i32
    %c0_i32_0 = arith.constant 0 : i32
    %c0_i32_1 = arith.constant 0 : i32
    return %arg1, %c0_i32, %c0_i32_0 : i32, i32, i32
  }
  func.func @transform_7(%arg0: i32, %arg1: i32) -> (i32, i32, i32) {
    %c0_i32 = arith.constant 0 : i32
    %c0_i32_0 = arith.constant 0 : i32
    %c0_i32_1 = arith.constant 0 : i32
    return %arg1, %c0_i32, %c0_i32_0 : i32, i32, i32
  }
  func.func @transform_8(%arg0: i32, %arg1: i32) -> (i32, i32, i32) {
    %c0_i32 = arith.constant 0 : i32
    %c0_i32_0 = arith.constant 0 : i32
    %c0_i32_1 = arith.constant 0 : i32
    return %arg1, %c0_i32, %c0_i32_0 : i32, i32, i32
  }
  func.func @transform_9(%arg0: i32, %arg1: i32) -> (i32, i32, i32) {
    %c0_i32 = arith.constant 0 : i32
    %c0_i32_0 = arith.constant 0 : i32
    %c0_i32_1 = arith.constant 0 : i32
    return %arg1, %c0_i32, %c0_i32_0 : i32, i32, i32
  }
  func.func @transform_10(%arg0: i32, %arg1: i32) -> (i32, i32, i32) {
    %c0_i32 = arith.constant 0 : i32
    %c0_i32_0 = arith.constant 0 : i32
    %c0_i32_1 = arith.constant 0 : i32
    return %arg1, %c0_i32, %c0_i32_0 : i32, i32, i32
  }
  func.func @transform_11(%arg0: i32, %arg1: i32) -> (i32, i32, i32) {
    %c0_i32 = arith.constant 0 : i32
    %c0_i32_0 = arith.constant 0 : i32
    %c0_i32_1 = arith.constant 0 : i32
    return %arg1, %c0_i32, %c0_i32_0 : i32, i32, i32
  }
  func.func @transform_12(%arg0: i32, %arg1: i32) -> (i32, i32, i32) {
    %c0_i32 = arith.constant 0 : i32
    %c0_i32_0 = arith.constant 0 : i32
    %c0_i32_1 = arith.constant 0 : i32
    return %arg1, %c0_i32, %c0_i32_0 : i32, i32, i32
  }
  func.func @transform_13(%arg0: i32, %arg1: i32) -> (i32, i32, i32) {
    %c0_i32 = arith.constant 0 : i32
    %c0_i32_0 = arith.constant 0 : i32
    %c0_i32_1 = arith.constant 0 : i32
    return %arg1, %c0_i32, %c0_i32_0 : i32, i32, i32
  }
  func.func @transform_14(%arg0: i32, %arg1: i32) -> (i32, i32, i32) {
    %c0_i32 = arith.constant 0 : i32
    %c0_i32_0 = arith.constant 0 : i32
    %c0_i32_1 = arith.constant 0 : i32
    return %arg1, %c0_i32, %c0_i32_0 : i32, i32, i32
  }
  func.func @transform_15(%arg0: i32, %arg1: i32) -> (i32, i32, i32) {
    %c0_i32 = arith.constant 0 : i32
    %c0_i32_0 = arith.constant 0 : i32
    %c0_i32_1 = arith.constant 0 : i32
    return %arg1, %c0_i32, %c0_i32_0 : i32, i32, i32
  }
  func.func @transform_16(%arg0: i32, %arg1: i32) -> (i32, i32) {
    %c0_i32 = arith.constant 0 : i32
    %c0_i32_0 = arith.constant 0 : i32
    %c0_i32_1 = arith.constant 0 : i32
    return %c0_i32, %c0_i32_0 : i32, i32
  }
  func.func @transform_17(%arg0: i32, %arg1: i32) -> (i32, i32) {
    %c0_i32 = arith.constant 0 : i32
    %c0_i32_0 = arith.constant 0 : i32
    %c0_i32_1 = arith.constant 0 : i32
    return %c0_i32, %c0_i32_0 : i32, i32
  }
  func.func @transform_18(%arg0: i32, %arg1: i32) -> (i32, i32) {
    %c0_i32 = arith.constant 0 : i32
    %c0_i32_0 = arith.constant 0 : i32
    %c0_i32_1 = arith.constant 0 : i32
    return %c0_i32, %c0_i32_0 : i32, i32
  }
  func.func @transform_19(%arg0: i32, %arg1: i32) -> (i32, i32) {
    %c0_i32 = arith.constant 0 : i32
    %c0_i32_0 = arith.constant 0 : i32
    %c0_i32_1 = arith.constant 0 : i32
    return %c0_i32, %c0_i32_0 : i32, i32
  }
  func.func @transform_20(%arg0: i32, %arg1: i32) -> (i32, i32, i32) {
    %c0_i32 = arith.constant 0 : i32
    %c0_i32_0 = arith.constant 0 : i32
    %c0_i32_1 = arith.constant 0 : i32
    return %arg0, %c0_i32, %c0_i32_0 : i32, i32, i32
  }
}

</mosaic_0001>

<bundles_post_ra>
// kernel: tpu_custom_call.1
= control target key start
LH: loop header
LB: loop body
LE: loop exit
PB: predicated region body
PF: predicated region fallthrough
CT: control target
= control target key end

     0   :  { %s2724_s22 = smov 0   ;;  %s2726_s23 = smov 0   ;;  %s3173_s0 = inlined_call_operand.vmem [shape: f32[2,17,32], index: 0, kind: input, shape index: {}]   ;;  %s3174_s1 = inlined_call_operand.vmem [shape: bf16[32,32], index: 1, kind: input, shape index: {}]   ;;  %s3175_s2 = inlined_call_operand.vmem [shape: f32[1,32], index: 2, kind: input, shape index: {}]   ;;  %s3176_s3 = inlined_call_operand.vmem [shape: f32[17,32], index: 3, kind: input, shape index: {}]   ;;  %s3177_s4 = inlined_call_operand.vmem [shape: f32[2,1,32], index: 4, kind: input, shape index: {}]   ;;  %s3178_s5 = inlined_call_operand.vmem [shape: f32[2,1,32], index: 5, kind: input, shape index: {}]   ;;  %s3179_s6 = inlined_call_operand.vmem [shape: bf16[2,32,96], index: 6, kind: input, shape index: {}]   ;;  %s3180_s7 = inlined_call_operand.vmem [shape: f32[2,1,96], index: 7, kind: input, shape index: {}]   ;;  %s3181_s8 = inlined_call_operand.vmem [shape: bf16[2,32,32], index: 8, kind: input, shape index: {}]   ;;  %s3182_s9 = inlined_call_operand.vmem [shape: f32[2,1,32], index: 9, kind: input, shape index: {}]   ;;  %s3183_s10 = inlined_call_operand.vmem [shape: f32[2,1,32], index: 10, kind: input, shape index: {}]   ;;  %s3184_s11 = inlined_call_operand.vmem [shape: f32[2,1,32], index: 11, kind: input, shape index: {}]   ;;  %s3185_s12 = inlined_call_operand.vmem [shape: bf16[2,32,128], index: 12, kind: input, shape index: {}]   ;;  %s3186_s13 = inlined_call_operand.vmem [shape: f32[2,1,128], index: 13, kind: input, shape index: {}]   ;;  %s3187_s14 = inlined_call_operand.vmem [shape: bf16[2,128,32], index: 14, kind: input, shape index: {}]   ;;  %s3188_s15 = inlined_call_operand.vmem [shape: f32[2,1,32], index: 15, kind: input, shape index: {}]   ;;  %s3189_s16 = inlined_call_operand.vmem [shape: f32[1,32], index: 16, kind: input, shape index: {}]   ;;  %s3190_s17 = inlined_call_operand.vmem [shape: f32[1,32], index: 17, kind: input, shape index: {}]   ;;  %s3191_s18 = inlined_call_operand.vmem [shape: bf16[32,16], index: 18, kind: input, shape index: {}]   ;;  %s3192_s19 = inlined_call_operand.vmem [shape: f32[1,16], index: 19, kind: input, shape index: {}]   ;;  %s3193_s20 = inlined_call_operand.vmem [shape: f32[2,17,16], index: 20, kind: output, shape index: {}]  }
   0x1   :  { %3201 = sst [smem:[#allocation10_spill]] %s3173_s0  ;;  %s2728_s24 = smov 0  }
   0x2   :  { %3202 = sst [smem:[#allocation11_spill]] %s3174_s1  ;;  %s2722_s1 = smov 0  }
   0x3   :  { %3203 = sst [smem:[#allocation12_spill]] %s3175_s2  ;;  %s2730_s2 = smov 0  }
   0x4   :  { %3204 = sst [smem:[#allocation13_spill]] %s3176_s3 }
   0x5   :  { %3205 = sst [smem:[#allocation14_spill]] %s3177_s4 }
   0x6   :  { %3206 = sst [smem:[#allocation15_spill]] %s3179_s6 }
   0x7   :  { %3207 = sst [smem:[#allocation16_spill]] %s3181_s8 }
   0x8   :  { %3208 = sst [smem:[#allocation17_spill]] %s3189_s16 }
   0x9   :  { %3209 = sst [smem:[#allocation18_spill]] %s3190_s17 }
   0xa   :  { %3210 = sst [smem:[#allocation19_spill]] %s3191_s18 }
   0xb   :  { %3211 = sst [smem:[#allocation20_spill]] %s3192_s19 }
   0xc   :  { %3212 = sst [smem:[#allocation21_spill]] %s3193_s20 }
   0xd LB: > { %3213 = sst [smem:[#allocation4_spill]] %s2584_s1  ;;  %s39_s25 = sadd.s32 1, %s2592_s23  ;;  %s2600_s2 = sphi %s2730_s2, %s30_s2   ;;  %s2596_s24 = sphi %s2728_s24, %s3246_s24   ;;  %s2592_s23 = sphi %s2726_s23, %s3245_s23   ;;  %s2588_s22 = sphi %s2724_s22, %s3244_s22   ;;  %s2584_s1 = sphi %s2722_s1, %s3243_s1  }
   0xe   : > { %3214 = sst [smem:[#allocation5_spill]] %s2592_s23  ;;  %s42_s3 = sadd.s32 1, %s2596_s24 }
   0xf   : > { %3215 = sst [smem:[#allocation6_spill]] %s2596_s24  ;;  %p40_p0 = scmp.ge.s32.totalorder %s39_s25, 2 }
  0x10   : > { %3216 = sst [smem:[#allocation7_spill]] %s2600_s2  ;;  %p2235_p1 = scmp.ge.s32.totalorder %s2600_s2, 1 }
  0x11   : > { %p678_p2 = scmp.lt.s32.totalorder %s2600_s2, 5  ;;  %s3248_s25 = smov (%p40_p0, %s39_s25), 0 }
  0x12   : > { %3217 = sst [smem:[#allocation8_spill]] %s3248_s25  ;;  %s3250_s3 = smov (!%p40_p0, %s42_s3), %s2596_s24 }
  0x13   : > { %p679_p3 = pnand %p2235_p1, %p678_p2  ;;  %p44_p4 = scmp.ge.s32.totalorder %s3250_s3, 2 }
  0x14   : > { %p780_p5 = scmp.lt.s32.totalorder (!%p679_p3), %s2588_s22, 1  ;;  %p785_p6 = scmp.lt.s32.totalorder (!%p679_p3), %s2584_s1, 1 }
  0x15   : > { %s3252_s3 = smov (%p44_p4, %s3250_s3), 0  ;;  %682 = sbr.rel (%p679_p3) target bundleno = 2660 (0xa64), region = 100 }
  0x16   : > { %3218 = sst [smem:[#allocation9_spill]] %s3252_s3 }
  0x17   : > { %s3220_s23 = sld [smem:[#allocation10_spill]] (!%p679_p3) }
  0x18   : > { %s3221_s6 = sld [smem:[#allocation15_spill]] (!%p679_p3) }
  0x19   : > { %s3222_s8 = sld [smem:[#allocation16_spill]] (!%p679_p3) }
  0x1a   : > { %s3254_s22 = smov (!%p780_p5, %s2588_s22), 1  ;;  %s3223_s30 = sld [smem:[#allocation21_spill]] }
  0x1b   : > { %s2756_s26 = scalar_select %p785_p6, %s2584_s1, 1 }
  0x1c   : > { %s2400_s27 = smul.u32 24, %s3254_s22 }
  0x1d   : > { %s2372_s19 = sshll.u32 %s2756_s26, 4  ;;  %s828_s24 = scalar_lea.vmem %s3188_s15, %s2756_s26 }
  0x1e   : > { %s784_s2 = scalar_lea.vmem %s3220_s23, %s2400_s27  ;;  %s2773_s18 = scalar_lea.vmem %s3221_s6, %s2372_s19 }
  0x1f   : > { %s2782_s29 = scalar_lea.vmem %s3222_s8, %s2372_s19  ;;  %s2799_s22 = scalar_lea.vmem %s3185_s12, %s2372_s19 }
  0x20   : > { %s2375_s8 = sshll.u32 %s2756_s26, 6  ;;  %s2818_s6 = scalar_lea.vmem %s3223_s30, %s2400_s27 }
  0x21   : > { %s2813_s3 = scalar_lea.vmem %s3187_s14, %s2375_s8  ;;  %s3224_s19 = sld [smem:[#allocation4_spill]] }
  0x27   : > { %p2246_p7 = scmp.ne.s32.totalorder %s3224_s19, 0 }
  0x28   : > { %s3225_s4 = sld [smem:[#allocation11_spill]] (!%p2246_p7) }
  0x29   : > { %838 = sbr.rel (%p2246_p7) target bundleno = 193 (0xc1), region = 104  ;;  %s3226_s30 = sld [smem:[#allocation12_spill]] (!%p2246_p7) }
  0x2a   : > { %s3227_s23 = sld [smem:[#allocation13_spill]] (!%p2246_p7) }
  0x2e   : > { %v2377_v0 = vld [vmem:[%s3225_s4 + $0x8] sm:$0xff]  ;;  %v2376_v1 = vld [vmem:[%s3225_s4] sm:$0xff]  ;;  %v841_v4 = vld [vmem:[%s784_s2 + $0x10] sm:$0x1]  ;;  %vm864_vm0 = vcmask 261120   ;;  %vm897_vm1 = vcmask 253952  }
  0x2f   : > { %877 = vmatpush.bf16.msra.mxu0 %v2377_v0  ;;  %2394 = vmatpush.bf16.msra.mxu1 %v2377_v0  ;;  %v839_v2 = vld [vmem:[%s784_s2] sm:$0xff]  ;;  %v840_v3 = vld [vmem:[%s784_s2 + $0x8] sm:$0xff]  ;;  %v847_v6 = vpack.c.bf16 %v841_v4, %v841_v4 }
  0x30   : > { %v846_v5 = vpack.c.bf16 %v840_v3, %v839_v2  ;;  %v2456_v7 = vld [vmem:[%s3226_s30] ss:$0 sm:$0xff]  ;;  %s3228_s25 = smov %s3227_s23 }
  0x31   : > { %v889_v9 = vld [vmem:[%s3227_s23] sm:$0xff]  ;;  %v891_v11 = vld [vmem:[%s3228_s25 + $0x10] sm:$0x1]  ;;  %v890_v17 = vld [vmem:[%s3228_s25 + $0x8] sm:$0xff] }
  0x33   : > { %878 = vmatpush.bf16.msra.mxu0 %v2376_v1  ;;  %2395 = vmatpush.bf16.msra.mxu1 %v2376_v1 }
  0x36   : > { %2255 = vmatmul.msk.bf16.vlgmr.msra.gmra.mxu0 %vm864_vm0, %v846_v5  ;;  %2256 = vmatmul.msk.bf16.vlgmr.msra.gmra.mxu1 %vm864_vm0, %v847_v6 }
  0xb3   : > { %v880_v8 = vpop.f32.mrf.mxu0  ;;  %v885_v10 = vpop.f32.mrf.mxu1 }
  0xb4   : > { %v881_v12 = vadd.f32 %v2456_v7, %v880_v8  ;;  %v886_v13 = vadd.f32 %v2456_v7, %v885_v10 }
  0xb6   : > { %v892_v14 = vadd.f32 %v889_v9, %v881_v12  ;;  %v894_v15 = vadd.f32 %v891_v11, %v886_v13 }
  0xb8   : > { %895 = vst.msk [vmem:[#allocation2] sm:$0xff] %vm864_vm0, %v892_v14 }
  0xb9   : > { %898 = vst.msk [vmem:[#allocation2 + $0x10] sm:$0x1] %vm897_vm1, %v894_v15 }
  0xbb   : > { %v882_v16 = vpop.f32.mrf.mxu0  ;;  %v887_v18 = vpop.f32.mrf.mxu1 }
  0xbc   : > { %v883_v19 = vadd.f32 %v2456_v7, %v882_v16 }
  0xbe   : > { %v893_v20 = vadd.f32 %v890_v17, %v883_v19 }
  0xc0   : > { %896 = vst.msk [vmem:[#allocation2 + $0x8] sm:$0xff] %vm864_vm0, %v893_v20 }
  0xc1 PF: > { %v2843_v21 = vld [vmem:[#allocation2 + $0x10] sm:$0x1]  ;;  %vm911_vm2 = vcmask 253952   ;;  %vm904_vm3 = vcmask 261120   ;;  %v2851_v25 = vld [vmem:[#allocation2] sm:$0xff]  ;;  %v2602_v27 = vmov 32.0   ;;  %s3231_s30 = scalar_lea.vmem %s3178_s5, %s2756_s26  ;;  %s3232_s23 = scalar_lea.vmem %s3180_s7, %s2756_s26 }
  0xc2   : > { %v912_v23 = vsel %vm911_vm2, %v2843_v21, 0.0  ;;  %v905_v26 = vsel %vm904_vm3, %v2851_v25, 0.0  ;;  %2485 = vrcp.f32 %v2602_v27  ;;  %v2379_v49 = vld [vmem:[%s2773_s18 + $0x8] sm:$0xff]  ;;  %v2378_v50 = vld [vmem:[%s2773_s18] sm:$0xff]  ;;  %s3229_s28 = sld [smem:[#allocation14_spill]]  ;;  %s2603_s2 = smov 96  }
  0xc3   : > { %913 = vadd.xlane.f32.xlu0 %v912_v23  ;;  %2396 = vmatpush.bf16.msra.mxu2 %v2379_v49  ;;  %v2478_v8 = vld [vmem:[%s3231_s30] ss:$0 sm:$0xff]  ;;  %s2604_s16 = smov 88   ;;  %s2605_s17 = smov 120   ;;  %vm1049_vm14 = vcmask 64512   ;;  %vm1143_vm15 = vcmask 1040384  }
  0xc4   : > { %1025 = vmatpush.bf16.msra.mxu0 %v2379_v49  ;;  %s2606_s19 = smov 80   ;;  %s2607_s18 = smov 72   ;;  %vm1091_vm0 = vcmask 138240   ;;  %vm1098_vm1 = vcmask 131072  }
  0xc5   : > { %s2608_s1 = smov 112   ;;  %s2611_s8 = smov 56  }
  0xc6   : > { %s2612_s27 = smov 40   ;;  %s2613_s30 = smov 48  }
  0xc7   : > { %v2845_v22 = vld [vmem:[#allocation2 + $0x8] sm:$0xff]  ;;  %2397 = vmatpush.bf16.msra.mxu2 %v2378_v50  ;;  %s2614_s20 = smov 8   ;;  %s2615_s21 = smov 16  }
  0xc8   : > { %v908_v24 = vsel %vm904_vm3, %v2845_v22, 0.0  ;;  %v2486_v28 = vpop.eup %2485  ;;  %1026 = vmatpush.bf16.msra.mxu0 %v2378_v50  ;;  %s3230_s0 = scalar_lea.vmem %s3229_s28, %s2756_s26  ;;  %s2609_s28 = smov 104  }
  0xc9   : > { %909 = vadd.xlane.f32.xlu1 %v908_v24  ;;  %v916_v29 = vmul.f32 32.0, %v2486_v28  ;;  %vm920_vm4 = vweird.f32 %v2486_v28  ;;  %v2477_v4 = vld [vmem:[%s3230_s0] ss:$0 sm:$0xff]  ;;  %s2610_s0 = smov 64  }
  0xcb   : > { %906 = vadd.xlane.f32.xlu0 %v905_v26  ;;  %v917_v30 = vsub.f32 1.0, %v916_v29 }
  0xcd   : > { %v918_v31 = vmul.f32 %v2486_v28, %v917_v30 }
  0xcf   : > { %v919_v32 = vadd.f32 %v2486_v28, %v918_v31 }
  0xd1   : > { %v2855_v33 = vsel %vm920_vm4, %v2486_v28, %v919_v32  ;;  %vm1174_vm4 = vcmask 57344  }
 0x136   : > { %v914_v34 = vpop.xlane.xlu0 %913 }
 0x137   : > { %v924_v35 = vmul.f32 %v2855_v33, %v914_v34  ;;  %v2479_v34 = vld [vmem:[%s3232_s23] ss:$0 sm:$0xff]  ;;  %s2616_s23 = smov 24  }
 0x139   : > { %v927_v36 = vsub.f32 %v2843_v21, %v924_v35 }
 0x13b   : > { %v930_v37 = vmul.f32 %v927_v36, %v927_v36 }
 0x13c   : > { %v910_v38 = vpop.xlane.xlu1 %909 }
 0x13d   : > { %v937_v39 = vsel %vm911_vm2, %v930_v37, 0.0  ;;  %v923_v42 = vmul.f32 %v2855_v33, %v910_v38 }
 0x13e   : > { %938 = vadd.xlane.f32.xlu1 %v937_v39  ;;  %v907_v40 = vpop.xlane.xlu0 %906 }
 0x13f   : > { %v922_v41 = vmul.f32 %v2855_v33, %v907_v40  ;;  %v2864_v44 = vsub.f32 %v2845_v22, %v923_v42 }
 0x141   : > { %v925_v43 = vsub.f32 %v2851_v25, %v922_v41  ;;  %v929_v47 = vmul.f32 %v2864_v44, %v2864_v44 }
 0x143   : > { %v928_v45 = vmul.f32 %v925_v43, %v925_v43  ;;  %v934_v48 = vsel %vm904_vm3, %v929_v47, 0.0 }
 0x145   : > { %v931_v46 = vsel %vm904_vm3, %v928_v45, 0.0 }
 0x146   : > { %932 = vadd.xlane.f32.xlu2 %v931_v46 }
 0x14e   : > { %935 = vadd.xlane.f32.xlu2 %v934_v48 }
 0x1b1   : > { %v939_v51 = vpop.xlane.xlu1 %938 }
 0x1b2   : > { %v942_v52 = vmul.f32 %v939_v51, %v2855_v33 }
 0x1b4   : > { %v945_v53 = vadd.f32 1e-05, %v942_v52 }
 0x1b6   : > { %2487 = vrsqrt.f32 %v945_v53  ;;  %vm972_vm6 = vweird.f32 %v945_v53 }
 0x1b9   : > { %v933_v54 = vpop.xlane.xlu2 %932 }
 0x1ba   : > { %v940_v55 = vmul.f32 %v933_v54, %v2855_v33 }
 0x1bc   : > { %v2488_v56 = vpop.eup %2487  ;;  %v943_v57 = vadd.f32 1e-05, %v940_v55 }
 0x1bd   : > { %v967_v58 = vmul.f32 %v2488_v56, %v945_v53  ;;  %vm973_vm5 = vweird.f32 %v2488_v56 }
 0x1be   : > { %2489 = vrsqrt.f32 %v943_v57  ;;  %vm974_vm7 = vmor %vm972_vm6, %vm973_vm5  ;;  %vm952_vm9 = vweird.f32 %v943_v57  ;;  %vm1316_vm5 = vcmask 130112   ;;  %vm1461_vm6 = vcmask 195712  }
 0x1bf   : > { %v968_v59 = vmul.f32 %v2488_v56, %v967_v58 }
 0x1c1   : > { %v969_v60 = vmul.f32 0.5, %v968_v59  ;;  %v936_v61 = vpop.xlane.xlu2 %935 }
 0x1c2   : > { %v941_v62 = vmul.f32 %v936_v61, %v2855_v33 }
 0x1c3   : > { %v970_v63 = vsub.f32 1.5, %v969_v60 }
 0x1c4   : > { %v2490_v0 = vpop.eup %2489  ;;  %v944_v1 = vadd.f32 1e-05, %v941_v62 }
 0x1c5   : > { %v971_v2 = vmul.f32 %v2488_v56, %v970_v63  ;;  %v947_v3 = vmul.f32 %v2490_v0, %v943_v57  ;;  %vm953_vm8 = vweird.f32 %v2490_v0 }
 0x1c6   : > { %2491 = vrsqrt.f32 %v944_v1  ;;  %vm954_vm10 = vmor %vm952_vm9, %vm953_vm8  ;;  %vm962_vm12 = vweird.f32 %v944_v1  ;;  %vm1606_vm8 = vcmask 261312   ;;  %vm1464_vm9 = vcmask 188544  }
 0x1c7   : > { %v975_v5 = vsel %vm974_vm7, %v2488_v56, %v971_v2  ;;  %v948_v6 = vmul.f32 %v2490_v0, %v947_v3  ;;  %vm1319_vm7 = vcmask 122944  }
 0x1c8   : > { %v978_v7 = vmul.f32 %v975_v5, %v927_v36 }
 0x1c9   : > { %v949_v9 = vmul.f32 0.5, %v948_v6 }
 0x1ca   : > { %v984_v10 = vmul.f32 %v2477_v4, %v978_v7 }
 0x1cb   : > { %v950_v11 = vsub.f32 1.5, %v949_v9 }
 0x1cc   : > { %v2492_v12 = vpop.eup %2491  ;;  %v990_v13 = vadd.f32 %v2478_v8, %v984_v10 }
 0x1cd   : > { %v951_v14 = vmul.f32 %v2490_v0, %v950_v11  ;;  %v957_v15 = vmul.f32 %v2492_v12, %v944_v1  ;;  %vm963_vm11 = vweird.f32 %v2492_v12 }
 0x1ce   : > { %v996_v16 = vpack.c.bf16 %v990_v13, %v990_v13  ;;  %vm964_vm13 = vmor %vm962_vm12, %vm963_vm11 }
 0x1cf   : > { %v958_v17 = vmul.f32 %v2492_v12, %v957_v15  ;;  %v955_v18 = vsel %vm954_vm10, %v2490_v0, %v951_v14  ;;  %vm1609_vm10 = vcmask 254144  }
 0x1d0   : > { %2266 = vmatmul.msk.bf16.vlgmr.msra.gmra.mxu2 %vm904_vm3, %v996_v16  ;;  %v976_v23 = vmul.f32 %v955_v18, %v925_v43 }
 0x1d1   : > { %v959_v19 = vmul.f32 0.5, %v958_v17 }
 0x1d2   : > { %v982_v28 = vmul.f32 %v2477_v4, %v976_v23 }
 0x1d3   : > { %v960_v20 = vsub.f32 1.5, %v959_v19 }
 0x1d4   : > { %v988_v30 = vadd.f32 %v2478_v8, %v982_v28 }
 0x1d5   : > { %v961_v24 = vmul.f32 %v2492_v12, %v960_v20 }
 0x1d7   : > { %v965_v26 = vsel %vm964_vm13, %v2492_v12, %v961_v24 }
 0x1d8   : > { %v977_v27 = vmul.f32 %v965_v26, %v2864_v44 }
 0x1da   : > { %v983_v29 = vmul.f32 %v2477_v4, %v977_v27 }
 0x1dc   : > { %v989_v31 = vadd.f32 %v2478_v8, %v983_v29 }
 0x1de   : > { %v995_v32 = vpack.c.bf16 %v989_v31, %v988_v30 }
 0x1e0   : > { %2265 = vmatmul.msk.bf16.vlgmr.msra.gmra.mxu0 %vm904_vm3, %v995_v32 }
 0x253   : > { %v1033_v35 = vpop.f32.mrf.mxu2 }
 0x254   : > { %v2893_v36 = vadd.f32 %v2479_v34, %v1033_v35 }
 0x256   : > { %1047 = vrot.lane.b32.xlu0 %v2893_v36, %s2603_s2  ;;  %v1039_v45 = vmul.f32 0.35355338, %v2893_v36 }
 0x25b   : > { %v1035_v37 = vpop.f32.mrf.mxu2 }
 0x25d   : > { %v1028_v38 = vpop.f32.mrf.mxu0 }
 0x25e   : > { %v1029_v39 = vadd.f32 %v2479_v34, %v1028_v38  ;;  %1186 = vrot.lane.b32.xlu0 %v2893_v36, %s2604_s16 }
 0x260   : > { %1043 = vrot.lane.b32.xlu2 %v1029_v39, %s2603_s2  ;;  %v1037_v40 = vmul.f32 0.35355338, %v1029_v39 }
 0x265   : > { %v1030_v41 = vpop.f32.mrf.mxu0 }
 0x266   : > { %v1031_v42 = vadd.f32 %v2479_v34, %v1030_v41  ;;  %1176 = vrot.lane.b32.xlu0 %v1037_v40, %s2605_s17 }
 0x268   : > { %1045 = vrot.lane.b32.xlu1 %v1031_v42, %s2603_s2  ;;  %1184 = vrot.lane.b32.xlu2 %v1031_v42, %s2604_s16  ;;  %v2897_v43 = vpack.i.bf16 %v1029_v39, %v1031_v42  ;;  %v1038_v44 = vmul.f32 0.35355338, %v1031_v42 }
 0x26e   : > { %1331 = vrot.lane.b32.xlu0 %v2893_v36, %s2606_s19 }
 0x270   : > { %1182 = vrot.lane.b32.xlu1 %v1029_v39, %s2604_s16  ;;  %1178 = vrot.lane.b32.xlu2 %v1038_v44, %s2605_s17  ;;  %s3233_s16 = scalar_lea.vmem %s3182_s9, %s2756_s26 }
 0x276   : > { %1474 = vrot.lane.b32.xlu0 %v1031_v42, %s2607_s18 }
 0x278   : > { %1180 = vrot.lane.b32.xlu1 %v1039_v45, %s2605_s17  ;;  %1476 = vrot.lane.b32.xlu2 %v2893_v36, %s2607_s18 }
 0x27e   : > { %1321 = vrot.lane.b32.xlu0 %v1037_v40, %s2608_s1 }
 0x280   : > { %1329 = vrot.lane.b32.xlu1 %v1031_v42, %s2606_s19  ;;  %1327 = vrot.lane.b32.xlu2 %v1029_v39, %s2606_s19  ;;  %s3234_s19 = scalar_lea.vmem %s3183_s10, %s2756_s26 }
 0x286   : > { %1468 = vrot.lane.b32.xlu0 %v1038_v44, %s2609_s28 }
 0x288   : > { %1472 = vrot.lane.b32.xlu1 %v1029_v39, %s2607_s18  ;;  %1466 = vrot.lane.b32.xlu2 %v1037_v40, %s2609_s28 }
 0x28e   : > { %2458 = vrot.lane.b32.xlu0 %v2897_v43, %s2610_s0 }
 0x290   : > { %1323 = vrot.lane.b32.xlu1 %v1038_v44, %s2608_s1  ;;  %1325 = vrot.lane.b32.xlu2 %v1039_v45, %s2608_s1 }
 0x298   : > { %1470 = vrot.lane.b32.xlu1 %v1039_v45, %s2609_s28  ;;  %s3235_s28 = scalar_lea.vmem %s3184_s11, %s2756_s26 }
 0x2a0   : > { %1130 = vrot.lane.b32.xlu1 %v2893_v36, %s2610_s0 }
 0x2ba   : > { %v1044_v46 = vpop.permute.xlu2 %1043 }
 0x2c2   : > { %v1185_v47 = vpop.permute.xlu2 %1184 }
 0x2c8   : > { %v1048_v48 = vpop.permute.xlu0 %1047 }
 0x2c9   : > { %2267 = vmatpush.xpose.msk.msra.mxu1 %vm1049_vm14, %v1048_v48 }
 0x2ca   : > { %v1179_v49 = vpop.permute.xlu2 %1178 }
 0x2d0   : > { %v1187_v50 = vpop.permute.xlu0 %1186 }
 0x2d1   : > { %2277 = vmatpush.xpose.msk.msra.mxu3 %vm1049_vm14, %v1187_v50 }
 0x2d2   : > { %v1477_v51 = vpop.permute.xlu2 %1476 }
 0x2d3   : > { %2297 = vmatpush.xpose.msk.msrb.mxu0 %vm1049_vm14, %v1477_v51 }
 0x2d5   : > { %2278 = vmatpush.xpose.msk.msra.mxu3 %vm1049_vm14, %v1185_v47 }
 0x2d8   : > { %v1177_v52 = vpop.permute.xlu0 %1176 }
 0x2da   : > { %v1046_v53 = vpop.permute.xlu1 %1045  ;;  %v1328_v59 = vpop.permute.xlu2 %1327 }
 0x2db   : > { %2268 = vmatpush.xpose.msk.msra.mxu1 %vm1049_vm14, %v1046_v53 }
 0x2df   : > { %2269 = vmatpush.xpose.msk.msra.mxu1 %vm1049_vm14, %v1044_v46 }
 0x2e0   : > { %v1332_v54 = vpop.permute.xlu0 %1331 }
 0x2e2   : > { %v1183_v55 = vpop.permute.xlu1 %1182  ;;  %2270 = vmatmul.msk.f32.vlgmr.msra.gmra.mxu1 %vm1049_vm14, %v1037_v40  ;;  %v1467_v62 = vpop.permute.xlu2 %1466 }
 0x2e3   : > { %2287 = vmatpush.xpose.msk.msrb.mxu1 %vm1049_vm14, %v1332_v54  ;;  %2279 = vmatpush.xpose.msk.msra.mxu3 %vm1049_vm14, %v1183_v55 }
 0x2e6   : > { %2280 = vmatmul.msk.f32.vlgmr.msra.gmra.mxu3 %vm1049_vm14, %v1177_v52 }
 0x2e8   : > { %v1475_v56 = vpop.permute.xlu0 %1474 }
 0x2e9   : > { %2298 = vmatpush.xpose.msk.msrb.mxu0 %vm1049_vm14, %v1475_v56 }
 0x2ea   : > { %v1181_v57 = vpop.permute.xlu1 %1180  ;;  %2271 = vmatmul.msk.f32.gmra.mxu1 %vm1049_vm14, %v1038_v44  ;;  %v1326_v1 = vpop.permute.xlu2 %1325 }
 0x2ee   : > { %2281 = vmatmul.msk.f32.gmra.mxu3 %vm1049_vm14, %v1179_v49 }
 0x2f0   : > { %v1322_v60 = vpop.permute.xlu0 %1321 }
 0x2f2   : > { %v1330_v58 = vpop.permute.xlu1 %1329  ;;  %2272 = vmatmul.msk.f32.gmra.mxu1 %vm1049_vm14, %v1039_v45 }
 0x2f3   : > { %2288 = vmatpush.xpose.msk.msrb.mxu1 %vm1049_vm14, %v1330_v58 }
 0x2f6   : > { %2282 = vmatmul.msk.f32.gmra.mxu3 %vm1049_vm14, %v1181_v57 }
 0x2f7   : > { %2289 = vmatpush.xpose.msk.msrb.mxu1 %vm1049_vm14, %v1328_v59 }
 0x2f8   : > { %v1469_v0 = vpop.permute.xlu0 %1468 }
 0x2fa   : > { %v1473_v61 = vpop.permute.xlu1 %1472  ;;  %2290 = vmatmul.msk.f32.vlgmr.msrb.gmra.mxu1 %vm1049_vm14, %v1322_v60 }
 0x2fb   : > { %2299 = vmatpush.xpose.msk.msrb.mxu0 %vm1049_vm14, %v1473_v61 }
 0x2fe   : > { %2300 = vmatmul.msk.f32.vlgmr.msrb.gmra.mxu0 %vm1049_vm14, %v1467_v62 }
 0x300   : > { %v2459_v3 = vpop.permute.xlu0 %2458 }
 0x301   : > { %v2460_v5 = vunpack.i.l.bf16 %v2459_v3  ;;  %v2461_v6 = vunpack.i.h.bf16 %v2459_v3 }
 0x302   : > { %v1324_v63 = vpop.permute.xlu1 %1323 }
 0x303   : > { %2291 = vmatmul.msk.f32.gmra.mxu1 %vm1049_vm14, %v1324_v63 }
 0x306   : > { %2301 = vmatmul.msk.f32.gmra.mxu0 %vm1049_vm14, %v1469_v0 }
 0x30a   : > { %v1471_v2 = vpop.permute.xlu1 %1470 }
 0x30b   : > { %2292 = vmatmul.msk.f32.gmra.mxu1 %vm1049_vm14, %v1326_v1 }
 0x30e   : > { %2302 = vmatmul.msk.f32.gmra.mxu0 %vm1049_vm14, %v1471_v2 }
 0x312   : > { %v1131_v4 = vpop.permute.xlu1 %1130 }
 0x313   : > { %2273 = vmatpush.msk.msrb.mxu2 %vm1143_vm15, %v1131_v4 }
 0x315   : > { %1160 = vmatpush.msrb.mxu2 %v2460_v5 }
 0x317   : > { %1161 = vmatpush.msrb.mxu2 %v2461_v6 }
 0x35f   : > { %v1082_v7 = vpop.f32.mrf.mxu1 }
 0x360   : > { %v1092_v8 = vsel %vm1091_vm0, %v1082_v7, -inf }
 0x361   : > { %1093 = vmax.xlane.f32.xlu0 %v1092_v8 }
 0x367   : > { %v2930_v9 = vpop.f32.mrf.mxu1 }
 0x368   : > { %v1095_v16 = vsel %vm1091_vm0, %v2930_v9, -inf }
 0x369   : > { %v1217_v10 = vpop.f32.mrf.mxu3 }
 0x36a   : > { %v1226_v11 = vsel %vm1091_vm0, %v1217_v10, -inf }
 0x36b   : > { %1227 = vmax.xlane.f32.xlu0 %v1226_v11 }
 0x36f   : > { %v2933_v12 = vpop.f32.mrf.mxu1 }
 0x370   : > { %v1099_v13 = vsel %vm1098_vm1, %v2933_v12, -inf }
 0x371   : > { %1100 = vmax.xlane.f32.xlu1 %v1099_v13  ;;  %v1220_v19 = vpop.f32.mrf.mxu3 }
 0x372   : > { %v1229_v20 = vsel %vm1091_vm0, %v1220_v19, -inf }
 0x377   : > { %v2947_v23 = vpop.f32.mrf.mxu1 }
 0x378   : > { %v1371_v24 = vsel %vm1091_vm0, %v2947_v23, -inf }
 0x379   : > { %v2961_v31 = vpop.f32.mrf.mxu3 }
 0x37a   : > { %v1232_v34 = vsel %vm1098_vm1, %v2961_v31, -inf }
 0x37b   : > { %v1507_v14 = vpop.f32.mrf.mxu0 }
 0x37c   : > { %v1516_v15 = vsel %vm1091_vm0, %v1507_v14, -inf }
 0x37d   : > { %1517 = vmax.xlane.f32.xlu2 %v1516_v15 }
 0x37f   : > { %1263 = vrot.lane.b32.xlu0 %v2893_v36, %s2611_s8 }
 0x380   : > { %v2951_v26 = vpop.f32.mrf.mxu1 }
 0x381   : > { %v1374_v28 = vsel %vm1091_vm0, %v2951_v26, -inf }
 0x383   : > { %v2941_v17 = vpop.f32.mrf.mxu0 }
 0x384   : > { %v1519_v18 = vsel %vm1091_vm0, %v2941_v17, -inf }
 0x385   : > { %1096 = vmax.xlane.f32.xlu2 %v1095_v16 }
 0x388   : > { %v2959_v30 = vpop.f32.mrf.mxu1 }
 0x389   : > { %v1377_v32 = vsel %vm1098_vm1, %v2959_v30, -inf }
 0x38a   : > { %2463 = vrot.lane.b32.xlu1 %v2897_v43, %s2611_s8 }
 0x38b   : > { %v2953_v27 = vpop.f32.mrf.mxu0 }
 0x38c   : > { %v1522_v29 = vsel %vm1098_vm1, %v2953_v27, -inf }
 0x38d   : > { %1520 = vmax.xlane.f32.xlu2 %v1519_v18 }
 0x395   : > { %1230 = vmax.xlane.f32.xlu2 %v1229_v20 }
 0x3a9   : > { %1372 = vmax.xlane.f32.xlu0 %v1371_v24 }
 0x3b1   : > { %1375 = vmax.xlane.f32.xlu0 %v1374_v28 }
 0x3b4   : > { %1523 = vmax.xlane.f32.xlu1 %v1522_v29 }
 0x3b9   : > { %1378 = vmax.xlane.f32.xlu0 %v1377_v32 }
 0x3bc   : > { %1233 = vmax.xlane.f32.xlu1 %v1232_v34 }
 0x3cd   : > { %1553 = vrot.lane.b32.xlu0 %v2893_v36, %s2612_s27 }
 0x3d4   : > { %v1094_v35 = vpop.xlane.xlu0 %1093 }
 0x3d5   : > { %v1102_v37 = vsub.f32 %v1082_v7, %v1094_v35  ;;  %2473 = vrot.lane.b32.xlu0 %v2897_v43, %s2612_s27  ;;  %s3236_s27 = scalar_lea.vmem %s3186_s13, %s2756_s26  ;;  %s3237_s26 = sld [smem:[#allocation4_spill]] }
 0x3d7   : > { %v1105_v38 = vmul.f32 1.442695, %v1102_v37 }
 0x3d9   : > { %2493 = vpow2.f32 %v1105_v38 }
 0x3db   : > { %p2359_p8 = scmp.ne.s32.totalorder %s3237_s26, 1 }
 0x3dc   : > { %s3240_s18 = sld [smem:[#allocation18_spill]] (!%p2359_p8) }
 0x3dd   : > { %s3241_s0 = sld [smem:[#allocation20_spill]] (!%p2359_p8) }
 0x3de   : > { %v1228_v41 = vpop.xlane.xlu0 %1227 }
 0x3df   : > { %v2969_v39 = vpop.eup %2493  ;;  %v1235_v46 = vsub.f32 %v1217_v10, %v1228_v41 }
 0x3e0   : > { %v1111_v40 = vsel %vm1091_vm0, %v2969_v39, 0.0 }
 0x3e1   : > { %1112 = vadd.xlane.f32.xlu1 %v1111_v40  ;;  %v1238_v49 = vmul.f32 1.442695, %v1235_v46 }
 0x3e4   : > { %v1101_v48 = vpop.xlane.xlu1 %1100 }
 0x3e5   : > { %v1104_v63 = vsub.f32 %v2933_v12, %v1101_v48 }
 0x3e7   : > { %v1109_v2 = vmul.f32 1.442695, %v1104_v63 }
 0x3f0   : > { %v1518_v42 = vpop.xlane.xlu2 %1517 }
 0x3f1   : > { %v1525_v44 = vsub.f32 %v1507_v14, %v1518_v42  ;;  %v1264_v45 = vpop.permute.xlu0 %1263 }
 0x3f2   : > { %2283 = vmatpush.msk.msra.mxu2 %vm1143_vm15, %v1264_v45 }
 0x3f3   : > { %v1528_v47 = vmul.f32 1.442695, %v1525_v44 }
 0x3f5   : > { %2495 = vpow2.f32 %v1528_v47 }
 0x3f6   : > { %2497 = vpow2.f32 %v1238_v49 }
 0x3f8   : > { %v1097_v50 = vpop.xlane.xlu2 %1096 }
 0x3f9   : > { %v1103_v52 = vsub.f32 %v2930_v9, %v1097_v50 }
 0x3fa   : > { %2468 = vrot.lane.b32.xlu1 %v2897_v43, %s2613_s30 }
 0x3fb   : > { %v2976_v51 = vpop.eup %2495  ;;  %v1107_v56 = vmul.f32 1.442695, %v1103_v52 }
 0x3fc   : > { %v2464_v53 = vpop.permute.xlu1 %2463  ;;  %v1534_v54 = vsel %vm1091_vm0, %v2976_v51, 0.0  ;;  %v2981_v59 = vpop.eup %2497 }
 0x3fd   : > { %v2465_v55 = vunpack.i.l.bf16 %v2464_v53  ;;  %1535 = vadd.xlane.f32.xlu2 %v1534_v54  ;;  %v2466_v57 = vunpack.i.h.bf16 %v2464_v53  ;;  %2499 = vpow2.f32 %v1107_v56  ;;  %v1244_v43 = vsel %vm1091_vm0, %v2981_v59, 0.0 }
 0x3ff   : > { %1292 = vmatpush.msra.mxu2 %v2465_v55 }
 0x400   : > { %v1521_v58 = vpop.xlane.xlu2 %1520 }
 0x401   : > { %1293 = vmatpush.msra.mxu2 %v2466_v57  ;;  %v1526_v3 = vsub.f32 %v2941_v17, %v1521_v58 }
 0x403   : > { %v2985_v61 = vpop.eup %2499  ;;  %v1530_v6 = vmul.f32 1.442695, %v1526_v3 }
 0x404   : > { %v1114_v1 = vsel %vm1091_vm0, %v2985_v61, 0.0 }
 0x405   : > { %1245 = vadd.xlane.f32.xlu2 %v1244_v43 }
 0x408   : > { %v1231_v60 = vpop.xlane.xlu2 %1230 }
 0x409   : > { %v1236_v62 = vsub.f32 %v1220_v19, %v1231_v60 }
 0x40b   : > { %v1240_v0 = vmul.f32 1.442695, %v1236_v62 }
 0x40d   : > { %2501 = vpow2.f32 %v1240_v0  ;;  %1115 = vadd.xlane.f32.xlu2 %v1114_v1 }
 0x40e   : > { %2503 = vpow2.f32 %v1109_v2 }
 0x40f   : > { %2505 = vpow2.f32 %v1530_v6 }
 0x413   : > { %v2991_v4 = vpop.eup %2501 }
 0x414   : > { %v1247_v5 = vsel %vm1091_vm0, %v2991_v4, 0.0  ;;  %v2995_v7 = vpop.eup %2503 }
 0x415   : > { %1248 = vadd.xlane.f32.xlu2 %v1247_v5  ;;  %v1117_v9 = vsel %vm1098_vm1, %v2995_v7, 0.0  ;;  %v2999_v10 = vpop.eup %2505 }
 0x416   : > { %v1537_v11 = vsel %vm1091_vm0, %v2999_v10, 0.0 }
 0x41c   : > { %v1373_v8 = vpop.xlane.xlu0 %1372 }
 0x41d   : > { %1118 = vadd.xlane.f32.xlu2 %v1117_v9  ;;  %v1380_v29 = vsub.f32 %v2947_v23, %v1373_v8 }
 0x41f   : > { %v1383_v32 = vmul.f32 1.442695, %v1380_v29 }
 0x424   : > { %1538 = vadd.xlane.f32.xlu1 %v1537_v11  ;;  %v1376_v12 = vpop.xlane.xlu0 %1375 }
 0x425   : > { %v1381_v35 = vsub.f32 %v2951_v26, %v1376_v12 }
 0x427   : > { %v1524_v18 = vpop.xlane.xlu1 %1523  ;;  %v1385_v23 = vmul.f32 1.442695, %v1381_v35 }
 0x428   : > { %v1527_v44 = vsub.f32 %v2953_v27, %v1524_v18 }
 0x42c   : > { %v1379_v13 = vpop.xlane.xlu0 %1378 }
 0x42d   : > { %v1382_v14 = vsub.f32 %v2959_v30, %v1379_v13 }
 0x42f   : > { %v1387_v15 = vmul.f32 1.442695, %v1382_v14  ;;  %v1234_v19 = vpop.xlane.xlu1 %1233 }
 0x430   : > { %v1237_v20 = vsub.f32 %v2961_v31, %v1234_v19 }
 0x431   : > { %2507 = vpow2.f32 %v1387_v15 }
 0x432   : > { %v1242_v24 = vmul.f32 1.442695, %v1237_v20 }
 0x434   : > { %2509 = vpow2.f32 %v1242_v24 }
 0x435   : > { %1408 = vrot.lane.b32.xlu2 %v2893_v36, %s2613_s30 }
 0x437   : > { %v3006_v16 = vpop.eup %2507 }
 0x438   : > { %v1395_v17 = vsel %vm1098_vm1, %v3006_v16, 0.0 }
 0x439   : > { %1396 = vadd.xlane.f32.xlu0 %v1395_v17 }
 0x43a   : > { %v2510_v34 = vpop.eup %2509 }
 0x43b   : > { %v1250_v40 = vsel %vm1098_vm1, %v2510_v34, 0.0 }
 0x43f   : > { %v1554_v28 = vpop.permute.xlu0 %1553 }
 0x447   : > { %v2474_v37 = vpop.permute.xlu0 %2473 }
 0x448   : > { %v2475_v31 = vunpack.i.l.bf16 %v2474_v37  ;;  %v2476_v41 = vunpack.i.h.bf16 %v2474_v37 }
 0x454   : > { %v1113_v30 = vpop.xlane.xlu1 %1112 }
 0x455   : > { %2511 = vrcp.f32 %v1113_v30 }
 0x456   : > { %2513 = vpow2.f32 %v1383_v32 }
 0x457   : > { %2515 = vpow2.f32 %v1385_v23 }
 0x45b   : > { %v2512_v36 = vpop.eup %2511 }
 0x45c   : > { %v1123_v38 = vmul.f32 %v2512_v36, %v2969_v39  ;;  %v2514_v42 = vpop.eup %2513  ;;  %v1532_v39 = vmul.f32 1.442695, %v1527_v44 }
 0x45d   : > { %v1389_v26 = vsel %vm1091_vm0, %v2514_v42, 0.0  ;;  %v2516_v45 = vpop.eup %2515 }
 0x45e   : > { %1251 = vadd.xlane.f32.xlu2 %v1250_v40  ;;  %2274 = vmatmul.msk.f32.vlgmr.msrb.gmra.mxu2 %vm1091_vm0, %v1123_v38  ;;  %2517 = vpow2.f32 %v1532_v39  ;;  %v1392_v46 = vsel %vm1091_vm0, %v2516_v45, 0.0 }
 0x45f   : > { %2303 = vmatpush.msk.msrb.mxu2 %vm1143_vm15, %v1554_v28 }
 0x461   : > { %1582 = vmatpush.msrb.mxu2 %v2475_v31 }
 0x463   : > { %1583 = vmatpush.msrb.mxu2 %v2476_v41  ;;  %v2381_v41 = vld [vmem:[%s2782_s29 + $0x8] sm:$0xff] }
 0x464   : > { %v3020_v48 = vpop.eup %2517  ;;  %1648 = vmatpush.bf16.msra.mxu1 %v2381_v41 }
 0x465   : > { %v1540_v49 = vsel %vm1098_vm1, %v3020_v48, 0.0 }
 0x466   : > { %1390 = vadd.xlane.f32.xlu2 %v1389_v26 }
 0x46c   : > { %v2469_v56 = vpop.permute.xlu1 %2468 }
 0x46d   : > { %v2470_v60 = vunpack.i.l.bf16 %v2469_v56  ;;  %v2471_v62 = vunpack.i.h.bf16 %v2469_v56 }
 0x46e   : > { %1393 = vadd.xlane.f32.xlu2 %v1392_v46 }
 0x470   : > { %v1536_v47 = vpop.xlane.xlu2 %1535 }
 0x476   : > { %1541 = vadd.xlane.f32.xlu2 %v1540_v49 }
 0x478   : > { %v1246_v50 = vpop.xlane.xlu2 %1245 }
 0x480   : > { %v1116_v52 = vpop.xlane.xlu2 %1115 }
 0x481   : > { %2519 = vrcp.f32 %v1116_v52 }
 0x487   : > { %v2520_v27 = vpop.eup %2519 }
 0x488   : > { %v1249_v53 = vpop.xlane.xlu2 %1248  ;;  %v1124_v54 = vmul.f32 %v2520_v27, %v2985_v61 }
 0x48a   : > { %2275 = vmatmul.msk.f32.gmra.mxu2 %vm1091_vm0, %v1124_v54  ;;  %v2480_v54 = vld [vmem:[%s3233_s16] ss:$0 sm:$0xff] }
 0x490   : > { %v1119_v55 = vpop.xlane.xlu2 %1118 }
 0x491   : > { %2521 = vrcp.f32 %v1119_v55 }
 0x492   : > { %2523 = vrcp.f32 %v1246_v50 }
 0x493   : > { %2525 = vrcp.f32 %v1249_v53 }
 0x497   : > { %v2522_v57 = vpop.eup %2521 }
 0x498   : > { %v1409_v58 = vpop.permute.xlu2 %1408  ;;  %v1125_v43 = vmul.f32 %v2522_v57, %v2995_v7  ;;  %v2524_v63 = vpop.eup %2523 }
 0x499   : > { %2293 = vmatpush.msk.msrb.mxu3 %vm1143_vm15, %v1409_v58  ;;  %v1256_v61 = vmul.f32 %v2524_v63, %v2981_v59  ;;  %v2526_v0 = vpop.eup %2525  ;;  %v1539_v7 = vpop.xlane.xlu1 %1538 }
 0x49a   : > { %2276 = vmatmul.msk.f32.gmra.mxu2 %vm1091_vm0, %v1125_v43  ;;  %v1257_v1 = vmul.f32 %v2526_v0, %v2991_v4 }
 0x49b   : > { %1437 = vmatpush.msrb.mxu3 %v2470_v60 }
 0x49d   : > { %1438 = vmatpush.msrb.mxu3 %v2471_v62 }
 0x4a2   : > { %2284 = vmatmul.msk.f32.vlgmr.msra.gmra.mxu2 %vm1091_vm0, %v1256_v61 }
 0x4aa   : > { %2285 = vmatmul.msk.f32.gmra.mxu2 %vm1091_vm0, %v1257_v1 }
 0x4ac   : > { %v1397_v13 = vpop.xlane.xlu0 %1396 }
 0x4d1   : > { %v1252_v2 = vpop.xlane.xlu2 %1251 }
 0x4d2   : > { %2527 = vrcp.f32 %v1252_v2 }
 0x4d3   : > { %2529 = vrcp.f32 %v1536_v47 }
 0x4d8   : > { %v2528_v3 = vpop.eup %2527 }
 0x4d9   : > { %v1391_v5 = vpop.xlane.xlu2 %1390  ;;  %v1258_v6 = vmul.f32 %v2528_v3, %v2510_v34  ;;  %v2530_v8 = vpop.eup %2529 }
 0x4da   : > { %2531 = vrcp.f32 %v1391_v5  ;;  %v1546_v59 = vmul.f32 %v2530_v8, %v2976_v51 }
 0x4db   : > { %2286 = vmatmul.msk.f32.gmra.mxu2 %vm1091_vm0, %v1258_v6  ;;  %2533 = vrcp.f32 %v1539_v7 }
 0x4e0   : > { %v2532_v9 = vpop.eup %2531 }
 0x4e1   : > { %v1394_v11 = vpop.xlane.xlu2 %1393  ;;  %v1163_v12 = vpop.f32.mrf.mxu2  ;;  %v1401_v4 = vmul.f32 %v2532_v9, %v2514_v42  ;;  %v2380_v42 = vld [vmem:[%s2782_s29] sm:$0xff] }
 0x4e2   : > { %2535 = vrcp.f32 %v1394_v11  ;;  %1172 = vst.msk [vmem:[#allocation3] sm:$0xff] %vm1049_vm14, %v1163_v12  ;;  %v2534_v14 = vpop.eup %2533  ;;  %1649 = vmatpush.bf16.msra.mxu1 %v2380_v42 }
 0x4e3   : > { %2294 = vmatmul.msk.f32.vlgmr.msrb.gmra.mxu3 %vm1091_vm0, %v1401_v4  ;;  %2304 = vmatmul.msk.f32.vlgmr.msrb.gmra.mxu2 %vm1091_vm0, %v1546_v59  ;;  %2537 = vrcp.f32 %v1397_v13  ;;  %v1547_v19 = vmul.f32 %v2534_v14, %v2999_v10 }
 0x4e8   : > { %v2536_v15 = vpop.eup %2535 }
 0x4e9   : > { %v1542_v17 = vpop.xlane.xlu2 %1541  ;;  %v1402_v18 = vmul.f32 %v2536_v15, %v2516_v45  ;;  %v2538_v51 = vpop.eup %2537 }
 0x4ea   : > { %2539 = vrcp.f32 %v1542_v17  ;;  %v1403_v24 = vmul.f32 %v2538_v51, %v3006_v16  ;;  %v2383_v17 = vld [vmem:[%s2799_s22 + $0x8] sm:$0xff]  ;;  %v2382_v51 = vld [vmem:[%s2799_s22] sm:$0xff]  ;;  %s3239_s22 = sld [smem:[#allocation17_spill]] (!%p2359_p8) }
 0x4eb   : > { %2295 = vmatmul.msk.f32.gmra.mxu3 %vm1091_vm0, %v1402_v18  ;;  %2305 = vmatmul.msk.f32.gmra.mxu2 %vm1091_vm0, %v1547_v19 }
 0x4ec   : > { %1777 = vmatpush.bf16.msra.mxu3 %v2383_v17 }
 0x4f0   : > { %v2540_v20 = vpop.eup %2539  ;;  %1778 = vmatpush.bf16.msra.mxu3 %v2382_v51 }
 0x4f1   : > { %v1548_v28 = vmul.f32 %v2540_v20, %v3020_v48 }
 0x4f3   : > { %2296 = vmatmul.msk.f32.gmra.mxu3 %vm1091_vm0, %v1403_v24  ;;  %2306 = vmatmul.msk.f32.gmra.mxu2 %vm1091_vm0, %v1548_v28 }
 0x50d   : > { %v1166_v29 = vpop.f32.mrf.mxu2 }
 0x50e   : > { %1173 = vst.msk [vmem:[#allocation3 + $0x8] sm:$0xff] %vm1049_vm14, %v1166_v29 }
 0x51d   : > { %v1169_v10 = vpop.f32.mrf.mxu2 }
 0x51e   : > { %1175 = vst.msk [vmem:[#allocation3 + $0x10] sm:$0x1] %vm1174_vm4, %v1169_v10 }
 0x525   : > { %v1295_v30 = vpop.f32.mrf.mxu2 }
 0x526   : > { %1307 = vrot.lane.b32.xlu2 %v1295_v30, %s2614_s20 }
 0x52d   : > { %v1298_v32 = vpop.f32.mrf.mxu2 }
 0x52e   : > { %1309 = vrot.lane.b32.xlu1 %v1298_v32, %s2614_s20 }
 0x55e   : > { %v1301_v34 = vpop.f32.mrf.mxu2 }
 0x566   : > { %v1440_v36 = vpop.f32.mrf.mxu3  ;;  %v1585_v16 = vpop.f32.mrf.mxu2 }
 0x567   : > { %1452 = vrot.lane.b32.xlu0 %v1440_v36, %s2615_s21 }
 0x56e   : > { %v1443_v35 = vpop.f32.mrf.mxu3  ;;  %v1588_v37 = vpop.f32.mrf.mxu2 }
 0x56f   : > { %1454 = vrot.lane.b32.xlu2 %v1443_v35, %s2615_s21  ;;  %1597 = vrot.lane.b32.xlu0 %v1585_v16, %s2616_s23 }
 0x570   : > { %1599 = vrot.lane.b32.xlu1 %v1588_v37, %s2616_s23 }
 0x576   : > { %v1446_v38 = vpop.f32.mrf.mxu3  ;;  %v1591_v40 = vpop.f32.mrf.mxu2 }
 0x577   : > { %1311 = vrot.lane.b32.xlu2 %v1301_v34, %s2614_s20  ;;  %1456 = vrot.lane.b32.xlu0 %v1446_v38, %s2615_s21  ;;  %s3238_s21 = sld [smem:[#allocation19_spill]] (!%p2359_p8) }
 0x578   : > { %1601 = vrot.lane.b32.xlu1 %v1591_v40, %s2616_s23 }
 0x580   : > { %v1308_v31 = vpop.permute.xlu2 %1307 }
 0x581   : > { %1317 = vst.msk [vmem:[#allocation3] sm:$0xff] %vm1316_vm5, %v1308_v31 }
 0x5a0   : > { %v1310_v23 = vpop.permute.xlu1 %1309 }
 0x5a1   : > { %1318 = vst.msk [vmem:[#allocation3 + $0x8] sm:$0xff] %vm1316_vm5, %v1310_v23 }
 0x5c9   : > { %v1455_v44 = vpop.permute.xlu2 %1454 }
 0x5ca   : > { %1463 = vst.msk [vmem:[#allocation3 + $0x8] sm:$0xff] %vm1461_vm6, %v1455_v44 }
 0x5d1   : > { %v1312_v26 = vpop.permute.xlu2 %1311 }
 0x5d2   : > { %1320 = vst.msk [vmem:[#allocation3 + $0x10] sm:$0x1] %vm1319_vm7, %v1312_v26 }
 0x5d9   : > { %v1453_v39 = vpop.permute.xlu0 %1452 }
 0x5da   : > { %1462 = vst.msk [vmem:[#allocation3] sm:$0xff] %vm1461_vm6, %v1453_v39  ;;  %v2481_v39 = vld [vmem:[%s3234_s19] ss:$0 sm:$0xff] }
 0x5e1   : > { %v1598_v45 = vpop.permute.xlu0 %1597 }
 0x5e2   : > { %1607 = vst.msk [vmem:[#allocation3] sm:$0xff] %vm1606_vm8, %v1598_v45  ;;  %v1600_v46 = vpop.permute.xlu1 %1599 }
 0x5e3   : > { %1608 = vst.msk [vmem:[#allocation3 + $0x8] sm:$0xff] %vm1606_vm8, %v1600_v46 }
 0x5e9   : > { %v1457_v47 = vpop.permute.xlu0 %1456  ;;  %v1611_v48 = vld [vmem:[#allocation3] sm:$0xff] }
 0x5ea   : > { %1465 = vst.msk [vmem:[#allocation3 + $0x10] sm:$0x1] %vm1464_vm9, %v1457_v47  ;;  %v1602_v49 = vpop.permute.xlu1 %1601  ;;  %v1612_v50 = vld [vmem:[#allocation3 + $0x8] sm:$0xff] }
 0x5eb   : > { %1610 = vst.msk [vmem:[#allocation3 + $0x10] sm:$0x1] %vm1609_vm10, %v1602_v49  ;;  %v1618_v52 = vpack.c.bf16 %v1612_v50, %v1611_v48  ;;  %v2482_v50 = vld [vmem:[%s3235_s28] ss:$0 sm:$0xff] }
 0x5ed   : > { %2315 = vmatmul.msk.bf16.vlgmr.msra.gmra.mxu1 %vm904_vm3, %v1618_v52 }
 0x5f2   : > { %v1613_v27 = vld [vmem:[#allocation3 + $0x10] sm:$0x1] }
 0x5f3   : > { %v1619_v53 = vpack.c.bf16 %v1613_v27, %v1613_v27 }
 0x5fd   : > { %2316 = vmatmul.msk.bf16.gmra.mxu1 %vm904_vm3, %v1619_v53 }
 0x66a   : > { %v1651_v55 = vpop.f32.mrf.mxu1 }
 0x66b   : > { %v1652_v56 = vadd.f32 %v2480_v54, %v1651_v55 }
 0x66d   : > { %v3056_v57 = vadd.f32 %v1652_v56, %v2851_v25 }
 0x66f   : > { %v1665_v58 = vsel %vm904_vm3, %v3056_v57, 0.0 }
 0x670   : > { %1666 = vadd.xlane.f32.xlu2 %v1665_v58 }
 0x672   : > { %v1653_v43 = vpop.f32.mrf.mxu1 }
 0x673   : > { %v1654_v60 = vadd.f32 %v2480_v54, %v1653_v43 }
 0x675   : > { %v3061_v62 = vadd.f32 %v1654_v60, %v2845_v22 }
 0x677   : > { %v1668_v63 = vsel %vm904_vm3, %v3061_v62, 0.0 }
 0x678   : > { %1669 = vadd.xlane.f32.xlu0 %v1668_v63 }
 0x67a   : > { %v1656_v61 = vpop.f32.mrf.mxu1 }
 0x67b   : > { %v1657_v0 = vadd.f32 %v2480_v54, %v1656_v61 }
 0x67d   : > { %v3066_v1 = vadd.f32 %v1657_v0, %v2843_v21 }
 0x67f   : > { %v1671_v25 = vsel %vm911_vm2, %v3066_v1, 0.0 }
 0x680   : > { %1672 = vadd.xlane.f32.xlu1 %v1671_v25 }
 0x682   : > { %v1658_v2 = vpop.f32.mrf.mxu1 }
 0x6e3   : > { %v1667_v3 = vpop.xlane.xlu2 %1666 }
 0x6e4   : > { %v1674_v5 = vmul.f32 %v1667_v3, %v2855_v33  ;;  %v2391_v3 = vld [vmem:[%s2813_s3 + $0x38] sm:$0xff] }
 0x6e5   : > { %1886 = vmatpush.bf16.msra.mxu0 %v2391_v3 }
 0x6e6   : > { %v1677_v22 = vsub.f32 %v3056_v57, %v1674_v5  ;;  %v2390_v5 = vld [vmem:[%s2813_s3 + $0x30] sm:$0xff] }
 0x6e8   : > { %v1680_v6 = vmul.f32 %v1677_v22, %v1677_v22 }
 0x6e9   : > { %1887 = vmatpush.bf16.msra.mxu0 %v2390_v5 }
 0x6ea   : > { %v1683_v7 = vsel %vm904_vm3, %v1680_v6, 0.0  ;;  %v2388_v6 = vld [vmem:[%s2813_s3 + $0x20] sm:$0xff] }
 0x6eb   : > { %v1670_v8 = vpop.xlane.xlu0 %1669  ;;  %1684 = vadd.xlane.f32.xlu2 %v1683_v7  ;;  %v2387_v7 = vld [vmem:[%s2813_s3 + $0x18] sm:$0xff] }
 0x6ec   : > { %v1675_v21 = vmul.f32 %v1670_v8, %v2855_v33  ;;  %v2386_v8 = vld [vmem:[%s2813_s3 + $0x10] sm:$0xff] }
 0x6ee   : > { %v1678_v9 = vsub.f32 %v3061_v62, %v1675_v21  ;;  %v2385_v21 = vld [vmem:[%s2813_s3 + $0x8] sm:$0xff] }
 0x6f0   : > { %v1681_v59 = vmul.f32 %v1678_v9, %v1678_v9 }
 0x6f2   : > { %v1686_v11 = vsel %vm904_vm3, %v1681_v59, 0.0  ;;  %v2483_v59 = vld [vmem:[%s3236_s27] ss:$0 sm:$0xff] }
 0x6f3   : > { %1687 = vadd.xlane.f32.xlu0 %v1686_v11  ;;  %v1673_v12 = vpop.xlane.xlu1 %1672 }
 0x6f4   : > { %v1676_v4 = vmul.f32 %v1673_v12, %v2855_v33 }
 0x6f6   : > { %v1679_v13 = vsub.f32 %v3066_v1, %v1676_v4 }
 0x6f8   : > { %v1682_v14 = vmul.f32 %v1679_v13, %v1679_v13 }
 0x6fa   : > { %v1689_v15 = vsel %vm911_vm2, %v1682_v14, 0.0 }
 0x6fb   : > { %1690 = vadd.xlane.f32.xlu2 %v1689_v15 }
 0x75e   : > { %v1685_v18 = vpop.xlane.xlu2 %1684 }
 0x75f   : > { %v1692_v19 = vmul.f32 %v1685_v18, %v2855_v33 }
 0x761   : > { %v1695_v20 = vadd.f32 1e-05, %v1692_v19 }
 0x763   : > { %2541 = vrsqrt.f32 %v1695_v20  ;;  %vm1704_vm12 = vweird.f32 %v1695_v20 }
 0x766   : > { %v1688_v24 = vpop.xlane.xlu0 %1687 }
 0x767   : > { %v1693_v28 = vmul.f32 %v1688_v24, %v2855_v33 }
 0x769   : > { %v2542_v29 = vpop.eup %2541  ;;  %v1696_v10 = vadd.f32 1e-05, %v1693_v28 }
 0x76a   : > { %v1699_v30 = vmul.f32 %v2542_v29, %v1695_v20  ;;  %vm1705_vm11 = vweird.f32 %v2542_v29 }
 0x76b   : > { %2543 = vrsqrt.f32 %v1696_v10  ;;  %vm1706_vm13 = vmor %vm1704_vm12, %vm1705_vm11  ;;  %vm1714_vm15 = vweird.f32 %v1696_v10 }
 0x76c   : > { %v1700_v32 = vmul.f32 %v2542_v29, %v1699_v30 }
 0x76e   : > { %v1701_v34 = vmul.f32 0.5, %v1700_v32  ;;  %v1691_v36 = vpop.xlane.xlu2 %1690 }
 0x76f   : > { %v1694_v16 = vmul.f32 %v1691_v36, %v2855_v33 }
 0x770   : > { %v1702_v35 = vsub.f32 1.5, %v1701_v34 }
 0x771   : > { %v2544_v37 = vpop.eup %2543  ;;  %v1697_v38 = vadd.f32 1e-05, %v1694_v16 }
 0x772   : > { %v1703_v40 = vmul.f32 %v2542_v29, %v1702_v35  ;;  %v1709_v31 = vmul.f32 %v2544_v37, %v1696_v10  ;;  %vm1715_vm14 = vweird.f32 %v2544_v37 }
 0x773   : > { %2545 = vrsqrt.f32 %v1697_v38  ;;  %vm1716_vm0 = vmor %vm1714_vm15, %vm1715_vm14  ;;  %vm1724_vm4 = vweird.f32 %v1697_v38 }
 0x774   : > { %v1710_v23 = vmul.f32 %v2544_v37, %v1709_v31  ;;  %v1707_v41 = vsel %vm1706_vm13, %v2542_v29, %v1703_v40 }
 0x775   : > { %v1728_v45 = vmul.f32 %v1707_v41, %v1677_v22  ;;  %v2389_v22 = vld [vmem:[%s2813_s3 + $0x28] sm:$0xff] }
 0x776   : > { %v1711_v42 = vmul.f32 0.5, %v1710_v23  ;;  %1888 = vmatpush.bf16.msra.mxu0 %v2389_v22 }
 0x777   : > { %v1734_v52 = vmul.f32 %v2481_v39, %v1728_v45 }
 0x778   : > { %v1712_v44 = vsub.f32 1.5, %v1711_v42 }
 0x779   : > { %v2546_v26 = vpop.eup %2545  ;;  %v1740_v56 = vadd.f32 %v2482_v50, %v1734_v52 }
 0x77a   : > { %v1713_v46 = vmul.f32 %v2544_v37, %v1712_v44  ;;  %v1719_v47 = vmul.f32 %v2546_v26, %v1697_v38  ;;  %vm1725_vm1 = vweird.f32 %v2546_v26  ;;  %1889 = vmatpush.bf16.msra.mxu0 %v2388_v6 }
 0x77b   : > { %vm1726_vm5 = vmor %vm1724_vm4, %vm1725_vm1 }
 0x77c   : > { %v1717_v48 = vsel %vm1716_vm0, %v2544_v37, %v1713_v46  ;;  %v1720_v49 = vmul.f32 %v2546_v26, %v1719_v47 }
 0x77d   : > { %v1729_v27 = vmul.f32 %v1717_v48, %v1678_v9  ;;  %v2384_v9 = vld [vmem:[%s2813_s3] sm:$0xff] }
 0x77e   : > { %v1721_v53 = vmul.f32 0.5, %v1720_v49  ;;  %1890 = vmatpush.bf16.msra.mxu0 %v2387_v7 }
 0x77f   : > { %v1735_v54 = vmul.f32 %v2481_v39, %v1729_v27 }
 0x780   : > { %v1722_v55 = vsub.f32 1.5, %v1721_v53 }
 0x781   : > { %v1741_v58 = vadd.f32 %v2482_v50, %v1735_v54 }
 0x782   : > { %v1723_v43 = vmul.f32 %v2546_v26, %v1722_v55  ;;  %1891 = vmatpush.bf16.msra.mxu0 %v2386_v8 }
 0x783   : > { %v1747_v60 = vpack.c.bf16 %v1741_v58, %v1740_v56 }
 0x784   : > { %v1727_v63 = vsel %vm1726_vm5, %v2546_v26, %v1723_v43 }
 0x785   : > { %2325 = vmatmul.msk.bf16.vlgmr.msra.gmra.mxu3 %vm904_vm3, %v1747_v60  ;;  %v1730_v61 = vmul.f32 %v1727_v63, %v1679_v13 }
 0x786   : > { %1892 = vmatpush.bf16.msra.mxu0 %v2385_v21 }
 0x787   : > { %v1736_v0 = vmul.f32 %v2481_v39, %v1730_v61 }
 0x789   : > { %v1742_v25 = vadd.f32 %v2482_v50, %v1736_v0  ;;  %v2484_v50 = vld [vmem:[%s828_s24] ss:$0 sm:$0xff] }
 0x78a   : > { %1893 = vmatpush.bf16.msra.mxu0 %v2384_v9 }
 0x78b   : > { %v1748_v2 = vpack.c.bf16 %v1742_v25, %v1742_v25 }
 0x795   : > { %2326 = vmatmul.msk.bf16.gmra.mxu3 %vm904_vm3, %v1748_v2 }
 0x808   : > { %v1780_v11 = vpop.f32.mrf.mxu3 }
 0x809   : > { %v1781_v12 = vadd.f32 %v2483_v59, %v1780_v11 }
 0x80b   : > { %v1792_v4 = vmul.f32 0.044715, %v1781_v12  ;;  %v1789_v23 = vmul.f32 0.5, %v1781_v12 }
 0x80d   : > { %v1795_v13 = vmul.f32 %v1792_v4, %v1781_v12 }
 0x80f   : > { %v1798_v14 = vmul.f32 %v1795_v13, %v1781_v12 }
 0x810   : > { %v1782_v15 = vpop.f32.mrf.mxu3 }
 0x811   : > { %v1801_v17 = vadd.f32 %v1798_v14, %v1781_v12  ;;  %v1783_v18 = vadd.f32 %v2483_v59, %v1782_v15 }
 0x813   : > { %v1793_v19 = vmul.f32 0.044715, %v1783_v18  ;;  %v1804_v51 = vmul.f32 0.7978845, %v1801_v17  ;;  %v1790_v41 = vmul.f32 0.5, %v1783_v18 }
 0x815   : > { %v1796_v20 = vmul.f32 %v1793_v19, %v1783_v18  ;;  %2547 = vtanh.f32 %v1804_v51 }
 0x817   : > { %v1799_v24 = vmul.f32 %v1796_v20, %v1783_v18 }
 0x818   : > { %v1785_v28 = vpop.f32.mrf.mxu3 }
 0x819   : > { %v1802_v29 = vadd.f32 %v1799_v24, %v1783_v18  ;;  %v1786_v10 = vadd.f32 %v2483_v59, %v1785_v28 }
 0x81b   : > { %v1805_v30 = vmul.f32 0.7978845, %v1802_v29  ;;  %v1794_v32 = vmul.f32 0.044715, %v1786_v10  ;;  %v2548_v36 = vpop.eup %2547  ;;  %v1791_v47 = vmul.f32 0.5, %v1786_v10 }
 0x81c   : > { %v1810_v38 = vadd.f32 1.0, %v2548_v36 }
 0x81d   : > { %2549 = vtanh.f32 %v1805_v30  ;;  %v1797_v34 = vmul.f32 %v1794_v32, %v1786_v10 }
 0x81e   : > { %v1813_v44 = vmul.f32 %v1810_v38, %v1789_v23 }
 0x81f   : > { %v1800_v16 = vmul.f32 %v1797_v34, %v1786_v10 }
 0x820   : > { %v1787_v35 = vpop.f32.mrf.mxu3 }
 0x821   : > { %v1803_v37 = vadd.f32 %v1800_v16, %v1786_v10 }
 0x823   : > { %v2550_v40 = vpop.eup %2549  ;;  %v1806_v31 = vmul.f32 0.7978845, %v1803_v37 }
 0x824   : > { %v1811_v42 = vadd.f32 1.0, %v2550_v40 }
 0x825   : > { %2551 = vtanh.f32 %v1806_v31 }
 0x826   : > { %v1814_v26 = vmul.f32 %v1811_v42, %v1790_v41 }
 0x828   : > { %v1832_v39 = vpack.c.bf16 %v1814_v26, %v1813_v44 }
 0x82a   : > { %1894 = vmatmul.bf16.vlgmr.msra.gmra.mxu0 %v1832_v39 }
 0x82b   : > { %v2552_v45 = vpop.eup %2551 }
 0x82c   : > { %v1812_v46 = vadd.f32 1.0, %v2552_v45 }
 0x82e   : > { %v1815_v48 = vmul.f32 %v1812_v46, %v1791_v47 }
 0x830   : > { %v1833_v49 = vpack.c.bf16 %v1815_v48, %v1815_v48 }
 0x83a   : > { %1899 = vmatmul.bf16.gmra.mxu0 %v1833_v49 }
 0x8a7   : > { %v1895_v52 = vpop.f32.mrf.mxu0 }
 0x8a8   : > { %v1896_v27 = vadd.f32 %v2484_v50, %v1895_v52 }
 0x8aa   : > { %v1904_v53 = vadd.f32 %v1896_v27, %v3056_v57 }
 0x8ac   : > { %1907 = vst.msk [vmem:[#allocation2] sm:$0xff] %vm904_vm3, %v1904_v53 }
 0x8af   : > { %v1897_v54 = vpop.f32.mrf.mxu0 }
 0x8b0   : > { %v1898_v55 = vadd.f32 %v2484_v50, %v1897_v54 }
 0x8b2   : > { %v1905_v56 = vadd.f32 %v1898_v55, %v3061_v62 }
 0x8b4   : > { %1908 = vst.msk [vmem:[#allocation2 + $0x8] sm:$0xff] %vm904_vm3, %v1905_v56 }
 0x8b7   : > { %v1900_v58 = vpop.f32.mrf.mxu0 }
 0x8b8   : > { %v1901_v43 = vadd.f32 %v2484_v50, %v1900_v58 }
 0x8ba   : > { %v1906_v60 = vadd.f32 %v1901_v43, %v3066_v1 }
 0x8bb   : > { %1913 = sbr.rel (%p2359_p8) target bundleno = 2660 (0xa64), region = 108 }
 0x8bc   : > { %1909 = vst.msk [vmem:[#allocation2 + $0x10] sm:$0x1] %vm911_vm2, %v1906_v60 }
 0x8bf   : > { %v1902_v63 = vpop.f32.mrf.mxu0 }
 0x8c0   : > { %v1916_v57 = vsel %vm904_vm3, %v1904_v53, 0.0  ;;  %v1922_v61 = vsel %vm911_vm2, %v1906_v60, 0.0  ;;  %v1919_v62 = vsel %vm904_vm3, %v1905_v56, 0.0  ;;  %v2393_v4 = vld [vmem:[%s3238_s21 + $0x8] sm:$0xff]  ;;  %v2392_v15 = vld [vmem:[%s3238_s21] sm:$0xff]  ;;  %vm2040_vm14 = vcmask 130048  }
 0x8c1   : > { %1917 = vadd.xlane.f32.xlu0 %v1916_v57  ;;  %1923 = vadd.xlane.f32.xlu1 %v1922_v61  ;;  %v2554_v47 = vld [vmem:[%s3240_s18] ss:$0 sm:$0xff]  ;;  %vm2043_vm15 = vcmask 122880  }
 0x8c2   : > { %2028 = vmatpush.bf16.msra.mxu0 %v2393_v4  ;;  %2398 = vmatpush.bf16.msra.mxu1 %v2393_v4  ;;  %v2555_v63 = vld [vmem:[%s3241_s0] ss:$0 sm:$0xff] }
 0x8c6   : > { %2029 = vmatpush.bf16.msra.mxu0 %v2392_v15  ;;  %2399 = vmatpush.bf16.msra.mxu1 %v2392_v15 }
 0x8c9   : > { %1920 = vadd.xlane.f32.xlu0 %v1919_v62 }
 0x934   : > { %v1918_v0 = vpop.xlane.xlu0 %1917  ;;  %v1924_v3 = vpop.xlane.xlu1 %1923 }
 0x935   : > { %v1925_v25 = vmul.f32 %v1918_v0, %v2855_v33  ;;  %v1927_v7 = vmul.f32 %v1924_v3, %v2855_v33 }
 0x937   : > { %v1928_v2 = vsub.f32 %v1904_v53, %v1925_v25  ;;  %v3128_v21 = vsub.f32 %v1906_v60, %v1927_v7 }
 0x939   : > { %v1931_v1 = vmul.f32 %v1928_v2, %v1928_v2  ;;  %v1933_v11 = vmul.f32 %v3128_v21, %v3128_v21 }
 0x93b   : > { %v1934_v5 = vsel %vm904_vm3, %v1931_v1, 0.0  ;;  %v1940_v12 = vsel %vm911_vm2, %v1933_v11, 0.0 }
 0x93c   : > { %1935 = vadd.xlane.f32.xlu1 %v1934_v5  ;;  %v1921_v22 = vpop.xlane.xlu0 %1920 }
 0x93d   : > { %v1926_v6 = vmul.f32 %v1921_v22, %v2855_v33 }
 0x93f   : > { %v1929_v8 = vsub.f32 %v1905_v56, %v1926_v6 }
 0x941   : > { %v1932_v9 = vmul.f32 %v1929_v8, %v1929_v8 }
 0x943   : > { %v1937_v59 = vsel %vm904_vm3, %v1932_v9, 0.0 }
 0x944   : > { %1938 = vadd.xlane.f32.xlu2 %v1937_v59 }
 0x94c   : > { %1941 = vadd.xlane.f32.xlu2 %v1940_v12 }
 0x9af   : > { %v1936_v13 = vpop.xlane.xlu1 %1935 }
 0x9b0   : > { %v1943_v14 = vmul.f32 %v1936_v13, %v2855_v33 }
 0x9b2   : > { %v1946_v17 = vadd.f32 1e-05, %v1943_v14 }
 0x9b4   : > { %2556 = vrsqrt.f32 %v1946_v17  ;;  %vm1955_vm6 = vweird.f32 %v1946_v17 }
 0x9b7   : > { %v1939_v18 = vpop.xlane.xlu2 %1938 }
 0x9b8   : > { %v1944_v19 = vmul.f32 %v1939_v18, %v2855_v33 }
 0x9ba   : > { %v2557_v51 = vpop.eup %2556  ;;  %v1947_v20 = vadd.f32 1e-05, %v1944_v19 }
 0x9bb   : > { %v1950_v24 = vmul.f32 %v2557_v51, %v1946_v17  ;;  %vm1956_vm2 = vweird.f32 %v2557_v51 }
 0x9bc   : > { %2558 = vrsqrt.f32 %v1947_v20  ;;  %vm1957_vm7 = vmor %vm1955_vm6, %vm1956_vm2  ;;  %vm1965_vm9 = vweird.f32 %v1947_v20 }
 0x9bd   : > { %v1951_v28 = vmul.f32 %v2557_v51, %v1950_v24 }
 0x9bf   : > { %v1952_v29 = vmul.f32 0.5, %v1951_v28  ;;  %v1942_v10 = vpop.xlane.xlu2 %1941 }
 0x9c0   : > { %v1945_v30 = vmul.f32 %v1942_v10, %v2855_v33  ;;  %v2553_v33 = vld [vmem:[%s3239_s22] ss:$0 sm:$0xff] }
 0x9c1   : > { %v1953_v32 = vsub.f32 1.5, %v1952_v29 }
 0x9c2   : > { %v2559_v34 = vpop.eup %2558  ;;  %v1948_v36 = vadd.f32 1e-05, %v1945_v30 }
 0x9c3   : > { %v1954_v16 = vmul.f32 %v2557_v51, %v1953_v32  ;;  %v1960_v35 = vmul.f32 %v2559_v34, %v1947_v20  ;;  %vm1966_vm8 = vweird.f32 %v2559_v34 }
 0x9c4   : > { %2560 = vrsqrt.f32 %v1948_v36  ;;  %vm1967_vm10 = vmor %vm1965_vm9, %vm1966_vm8  ;;  %vm1975_vm12 = vweird.f32 %v1948_v36 }
 0x9c5   : > { %v1961_v37 = vmul.f32 %v2559_v34, %v1960_v35  ;;  %v1958_v38 = vsel %vm1957_vm7, %v2557_v51, %v1954_v16 }
 0x9c6   : > { %v1979_v41 = vmul.f32 %v1958_v38, %v1928_v2 }
 0x9c7   : > { %v1962_v40 = vmul.f32 0.5, %v1961_v37 }
 0x9c8   : > { %v1985_v46 = vmul.f32 %v2553_v33, %v1979_v41 }
 0x9c9   : > { %v1963_v31 = vsub.f32 1.5, %v1962_v40 }
 0x9ca   : > { %v2561_v23 = vpop.eup %2560  ;;  %v1991_v52 = vadd.f32 %v2554_v47, %v1985_v46 }
 0x9cb   : > { %v1964_v42 = vmul.f32 %v2559_v34, %v1963_v31  ;;  %v1970_v44 = vmul.f32 %v2561_v23, %v1948_v36  ;;  %vm1976_vm11 = vweird.f32 %v2561_v23 }
 0x9cc   : > { %vm1977_vm13 = vmor %vm1975_vm12, %vm1976_vm11 }
 0x9cd   : > { %v1971_v26 = vmul.f32 %v2561_v23, %v1970_v44  ;;  %v1968_v39 = vsel %vm1967_vm10, %v2559_v34, %v1964_v42 }
 0x9ce   : > { %v1980_v45 = vmul.f32 %v1968_v39, %v1929_v8 }
 0x9cf   : > { %v1972_v48 = vmul.f32 0.5, %v1971_v26 }
 0x9d0   : > { %v1986_v49 = vmul.f32 %v2553_v33, %v1980_v45 }
 0x9d1   : > { %v1973_v50 = vsub.f32 1.5, %v1972_v48 }
 0x9d2   : > { %v1992_v27 = vadd.f32 %v2554_v47, %v1986_v49 }
 0x9d3   : > { %v1974_v53 = vmul.f32 %v2561_v23, %v1973_v50 }
 0x9d4   : > { %v1998_v54 = vpack.c.bf16 %v1992_v27, %v1991_v52 }
 0x9d5   : > { %v1978_v55 = vsel %vm1977_vm13, %v2561_v23, %v1974_v53 }
 0x9d6   : > { %2368 = vmatmul.msk.bf16.vlgmr.msra.gmra.mxu0 %vm904_vm3, %v1998_v54  ;;  %v1981_v56 = vmul.f32 %v1978_v55, %v3128_v21 }
 0x9d8   : > { %v1987_v58 = vmul.f32 %v2553_v33, %v1981_v56 }
 0x9da   : > { %v1993_v43 = vadd.f32 %v2554_v47, %v1987_v58 }
 0x9dc   : > { %v1999_v60 = vpack.c.bf16 %v1993_v43, %v1993_v43 }
 0x9de   : > { %2369 = vmatmul.msk.bf16.vlgmr.msra.gmra.mxu1 %vm904_vm3, %v1999_v60 }
 0xa53   : > { %v2031_v57 = vpop.f32.mrf.mxu0 }
 0xa54   : > { %v2032_v61 = vadd.f32 %v2555_v63, %v2031_v57 }
 0xa56   : > { %2041 = vst.msk [vmem:[%s2818_s6] sm:$0xff] %vm2040_vm14, %v2032_v61 }
 0xa5b   : > { %v2033_v62 = vpop.f32.mrf.mxu0  ;;  %v2036_v0 = vpop.f32.mrf.mxu1 }
 0xa5c   : > { %v2034_v25 = vadd.f32 %v2555_v63, %v2033_v62  ;;  %v2037_v2 = vadd.f32 %v2555_v63, %v2036_v0 }
 0xa5e   : > { %2042 = vst.msk [vmem:[%s2818_s6 + $0x8] sm:$0xff] %vm2040_vm14, %v2034_v25 }
 0xa5f   : > { %2044 = vst.msk [vmem:[%s2818_s6 + $0x10] sm:$0x1] %vm2043_vm15, %v2037_v2 }
 0xa63   : > { %v2038_v1 = vpop.f32.mrf.mxu1 }
 0xa64 PF: > { %s3242_s8 = sld [smem:[#allocation7_spill]] }
 0xa65   : > { %s3243_s1 = sld [smem:[#allocation5_spill]] }
 0xa66   : > { %s3244_s22 = sld [smem:[#allocation6_spill]] }
 0xa67   : > { %s3245_s23 = sld [smem:[#allocation8_spill]] }
 0xa68   : > { %s3246_s24 = sld [smem:[#allocation9_spill]] }
 0xa6a   : > { %s30_s2 = sadd.s32 1, %s3242_s8  }
 0xa6b   : > { %p27_p9 = scmp.ge.s32.totalorder %s30_s2, 6  }
 0xa6d   :  { %29 = sbr.rel (!%p27_p9) target bundleno = 13 (0xd), region = 174 }

</bundles_post_ra>
